<compile_context>
chip_gen: v6e
topology: v6e:2x2x1
jax: 0.10.0
libtpu: 0.0.40
codegen_flags: <defaults>
</compile_context>

<pallas_src>
import jax
import jax.numpy as jnp
import numpy as np
from jax.experimental import pallas as pl
from jax.experimental.pallas import tpu as pltpu


def _round_up(x, m):
    return (x + m - 1) // m * m


# ----------------------------- Pallas kernel --------------------------------
def osg_decoder_kernel(feat_ref, w1_ref, b1_ref, w2_ref, b2_ref, out_ref):
    # feat_ref: (3, TILE_M, C)  tri-plane features for TILE_M sample points
    # w1_ref:   (C, H)          FC1 effective weight (already * lr_mul/sqrt(C))
    # b1_ref:   (1, H)
    # w2_ref:   (H, 33)         fused FC2 weight (col 0 = sigma, cols 1..32 = rgb)
    # b2_ref:   (1, 33)
    # out_ref:  (TILE_M, 33)    col 0 = raw sigma, cols 1..32 = scaled sigmoid rgb

    # mean over the 3 planes (sampled_features.mean(1) in the PyTorch code);
    # accumulate in f32 so the optional bf16 feature path stays accurate.
    x = (feat_ref[0].astype(jnp.float32)
         + feat_ref[1].astype(jnp.float32)
         + feat_ref[2].astype(jnp.float32)) * (1.0 / 3.0)           # (TILE_M, C)

    # FC1 + Softplus (torch.nn.Softplus default: beta=1, threshold=20)
    h = jnp.dot(x, w1_ref[...], preferred_element_type=jnp.float32) + b1_ref[...]
    h = jnp.where(h > 20.0, h, jnp.log1p(jnp.exp(jnp.minimum(h, 20.0))))

    # Fused FC2: one MXU pass, one lane-contiguous output tile.
    y = jnp.dot(h, w2_ref[...], preferred_element_type=jnp.float32) + b2_ref[...]

    # rgb = sigmoid(y[:, 1:]) * (1 + 2*0.001) - 0.001 ; sigma = y[:, 0:1]
    # sigmoid via EUP exp + approximate reciprocal (EUP slot, off the VPU).
    sig = pl.reciprocal(1.0 + jnp.exp(-y), approx=True) * (1.0 + 2.0 * 0.001) - 0.001
    col = jax.lax.broadcasted_iota(jnp.int32, y.shape, dimension=1)
    out_ref[...] = jnp.where(col == 0, y, sig)


def osg_decoder_pallas(sampled_features, params, *, tile_m=1024, feature_dtype=None):
    """sampled_features: [N, 3, M, C] (native tri-plane sample layout, no wrapper
    transpose).  Returns rgb [N, M, 32], sigma [N, M, 1]."""
    N, P, M, C = sampled_features.shape
    assert P == 3 and C == 32
    w1_eff, b1, w2_eff, b2 = params
    hidden, out_dim = w2_eff.shape

    if feature_dtype is not None:
        # Memory-bound kernel: narrower features halve HBM read traffic.
        sampled_features = sampled_features.astype(feature_dtype)

    # Tile sizing: large tiles amortize the ~0.35us per-grid-step overhead;
    # keep tile_m a multiple of 32 so (sublane, lane) layout rules hold for
    # both f32 and bf16 feature blocks.
    tile_m = max(32, min(tile_m, _round_up(M, 32)))
    tile_m = _round_up(tile_m, 32)
    Mp = _round_up(M, tile_m)
    if Mp != M:
        sampled_features = jnp.pad(
            sampled_features, ((0, 0), (0, 0), (0, Mp - M), (0, 0)))

    grid = (N, Mp // tile_m)
    out = pl.pallas_call(
        osg_decoder_kernel,
        out_shape=jax.ShapeDtypeStruct((N, Mp, out_dim), jnp.float32),
        grid_spec=pltpu.PrefetchScalarGridSpec(
            num_scalar_prefetch=0,
            grid=grid,
            in_specs=[
                # Native [N, 3, M, C] layout; batch dim squeezed in the kernel.
                # TODO(synk): add pipeline_mode=pl.Buffered(3) here if DMA is
                #             still exposed after the tile-size bump.
                pl.BlockSpec((pl.Squeezed(), P, tile_m, C),
                             lambda n, i: (n, 0, i, 0)),
                pl.BlockSpec((C, hidden), lambda n, i: (0, 0)),
                pl.BlockSpec((1, hidden), lambda n, i: (0, 0)),
                pl.BlockSpec((hidden, out_dim), lambda n, i: (0, 0)),
                pl.BlockSpec((1, out_dim), lambda n, i: (0, 0)),
            ],
            out_specs=pl.BlockSpec((pl.Squeezed(), tile_m, out_dim),
                                   lambda n, i: (n, i, 0)),
        ),
        compiler_params=pltpu.CompilerParams(
            dimension_semantics=("parallel", "parallel")),
    )(sampled_features, w1_eff, b1, w2_eff, b2)

    out = out[:, :M]                      # drop any tail padding
    rgb = out[..., 1:]                    # cols 1..32
    sigma = out[..., 0:1]                 # col 0
    return rgb, sigma


# ------------------------- parameter construction ---------------------------
def init_osg_decoder_params(key, n_features=32, hidden=64, out_dim=33, lr_mul=1.0):
    """Deterministic synthetic parameters matching OSGDecoder's shapes:
         FC1: weight [hidden, n_features], bias [hidden]
         FC2: weight [1+32, hidden],       bias [1+32]
       FullyConnectedLayer applies weight * (lr_mul/sqrt(in)) and bias * lr_mul
       at forward time; those gains are folded into the effective matrices and
       FC2 is kept fused (col 0 = sigma, cols 1..32 = rgb)."""
    k1, k2, k3, k4 = jax.random.split(key, 4)
    w1 = jax.random.normal(k1, (hidden, n_features), jnp.float32) / lr_mul
    b1 = 0.1 * jax.random.normal(k2, (hidden,), jnp.float32)
    w2 = jax.random.normal(k3, (out_dim, hidden), jnp.float32) / lr_mul
    b2 = 0.1 * jax.random.normal(k4, (out_dim,), jnp.float32)

    w1_eff = (w1 * (lr_mul / np.sqrt(n_features))).T           # (C, hidden)
    b1_eff = (b1 * lr_mul).reshape(1, hidden)
    w2_eff = (w2 * (lr_mul / np.sqrt(hidden))).T                # (hidden, 33)
    b2_eff = (b2 * lr_mul).reshape(1, out_dim)
    return (w1_eff, b1_eff, w2_eff, b2_eff)


# --------------------------- pure-JAX reference ------------------------------
def osg_decoder_ref(sampled_features, params):
    w1_eff, b1, w2_eff, b2 = params
    x = jnp.mean(sampled_features.astype(jnp.float32), axis=1)   # [N, M, C]
    N, M, C = x.shape
    x = x.reshape(N * M, C)
    h = x @ w1_eff + b1
    h = jnp.where(h > 20.0, h, jnp.log1p(jnp.exp(jnp.minimum(h, 20.0))))
    y = h @ w2_eff + b2
    rgb = jax.nn.sigmoid(y[:, 1:]) * (1 + 2 * 0.001) - 0.001
    sigma = y[:, 0:1]
    return rgb.reshape(N, M, 32), sigma.reshape(N, M, 1)


# --------------------------- generator front-end -----------------------------
def triplane_generator_forward(sampled_features, decoder_params, **kw):
    """Simplified TriPlaneGenerator forward: only the decoder hot path runs on TPU.
    # TODO(synk): StyleGAN2Backbone mapping/synthesis, RaySampler, ImportanceRenderer
    #             volume integration and SuperresolutionHybrid8XDC are not provided
    #             as source; `sampled_features` stands in for the tri-plane samples
    #             they would produce.  Folding the plane-mean into a lane-dense
    #             K=96 FC1 belongs in that upstream grid_sample producer.
    """
    rgb, sigma = osg_decoder_pallas(sampled_features, decoder_params, **kw)
    return {"rgb": rgb, "sigma": sigma}


if __name__ == "__main__":
    key = jax.random.PRNGKey(0)
    k_feat, k_par = jax.random.split(key)

    # Small shapes consistent with the module: N=2 batches, M = 16*16 rendering
    # points, 3 planes, 32 features per plane.
    N, M, C = 2, 16 * 16, 32
    sampled_features = jax.random.normal(k_feat, (N, 3, M, C), jnp.float32)
    params = init_osg_decoder_params(k_par)

    rgb_ref, sigma_ref = osg_decoder_ref(sampled_features, params)

    # f32 feature path (default)
    out = triplane_generator_forward(sampled_features, params)
    rgb = jax.block_until_ready(out["rgb"])
    sigma = jax.block_until_ready(out["sigma"])
    np.testing.assert_allclose(np.asarray(sigma), np.asarray(sigma_ref),
                               rtol=1e-5, atol=1e-5)
    # rgb uses the EUP approximate reciprocal for the sigmoid -> slightly looser
    np.testing.assert_allclose(np.asarray(rgb), np.asarray(rgb_ref),
                               rtol=5e-3, atol=5e-3)

    # bf16 feature path (HBM-bandwidth lever; biggest relative win on v5e)
    out_bf16 = triplane_generator_forward(sampled_features, params,
                                          feature_dtype=jnp.bfloat16)
    rgb_b = jax.block_until_ready(out_bf16["rgb"])
    sigma_b = jax.block_until_ready(out_bf16["sigma"])
    np.testing.assert_allclose(np.asarray(rgb_b), np.asarray(rgb_ref),
                               rtol=5e-2, atol=3e-2)
    np.testing.assert_allclose(np.asarray(sigma_b), np.asarray(sigma_ref),
                               rtol=5e-2, atol=3e-2)

    print("KERNEL_OK")
</pallas_src>

<mosaic_0001>
module attributes {stable_mosaic.version = 11 : i64} {
  func.func @osg_decoder_kernel(%arg0: i32, %arg1: i32, %arg2: memref<1x3x256x32xf32, #tpu.memory_space<vmem>>, %arg3: memref<32x64xf32, #tpu.memory_space<vmem>>, %arg4: memref<1x64xf32, #tpu.memory_space<vmem>>, %arg5: memref<64x33xf32, #tpu.memory_space<vmem>>, %arg6: memref<1x33xf32, #tpu.memory_space<vmem>>, %arg7: memref<1x256x33xf32, #tpu.memory_space<vmem>>) attributes {dimension_semantics = [#tpu.dimension_semantics<parallel>, #tpu.dimension_semantics<parallel>], iteration_bounds = array<i64: 2, 1>, scalar_prefetch = 0 : i64, scratch_operands = 0 : i64, tpu.core_type = #tpu.core_type<tc>, window_params = [{transform_indices = @transform_0, window_bounds = array<i64: 1, 3, 256, 32>}, {pipeline_mode = #tpu.pipeline_mode<synchronous>, transform_indices = @transform_1, window_bounds = array<i64: 32, 64>}, {pipeline_mode = #tpu.pipeline_mode<synchronous>, transform_indices = @transform_2, window_bounds = array<i64: 1, 64>}, {pipeline_mode = #tpu.pipeline_mode<synchronous>, transform_indices = @transform_3, window_bounds = array<i64: 64, 33>}, {pipeline_mode = #tpu.pipeline_mode<synchronous>, transform_indices = @transform_4, window_bounds = array<i64: 1, 33>}, {transform_indices = @transform_5, window_bounds = array<i64: 1, 256, 33>}]} {
    %c0 = arith.constant 0 : index
    %c0_0 = arith.constant 0 : index
    %c0_1 = arith.constant 0 : index
    %c0_2 = arith.constant 0 : index
    %0 = vector.load %arg2[%c0, %c0_0, %c0_1, %c0_2] : memref<1x3x256x32xf32, #tpu.memory_space<vmem>>, vector<1x1x256x32xf32>
    %1 = vector.shape_cast %0 : vector<1x1x256x32xf32> to vector<256x32xf32>
    %c0_3 = arith.constant 0 : index
    %c1 = arith.constant 1 : index
    %c0_4 = arith.constant 0 : index
    %c0_5 = arith.constant 0 : index
    %2 = vector.load %arg2[%c0_3, %c1, %c0_4, %c0_5] : memref<1x3x256x32xf32, #tpu.memory_space<vmem>>, vector<1x1x256x32xf32>
    %3 = vector.shape_cast %2 : vector<1x1x256x32xf32> to vector<256x32xf32>
    %4 = arith.addf %1, %3 : vector<256x32xf32>
    %c0_6 = arith.constant 0 : index
    %c2 = arith.constant 2 : index
    %c0_7 = arith.constant 0 : index
    %c0_8 = arith.constant 0 : index
    %5 = vector.load %arg2[%c0_6, %c2, %c0_7, %c0_8] : memref<1x3x256x32xf32, #tpu.memory_space<vmem>>, vector<1x1x256x32xf32>
    %6 = vector.shape_cast %5 : vector<1x1x256x32xf32> to vector<256x32xf32>
    %7 = arith.addf %4, %6 : vector<256x32xf32>
    %cst = arith.constant 0.333333343 : f32
    %8 = vector.broadcast %cst : f32 to vector<256x32xf32>
    %9 = arith.mulf %7, %8 : vector<256x32xf32>
    %c0_9 = arith.constant 0 : index
    %c0_10 = arith.constant 0 : index
    %10 = vector.load %arg3[%c0_9, %c0_10] : memref<32x64xf32, #tpu.memory_space<vmem>>, vector<32x64xf32>
    %cst_11 = arith.constant dense<0.000000e+00> : vector<256x64xf32>
    %11 = tpu.matmul %9, %10, %cst_11 {dimension_numbers = #tpu.dot_dimension_numbers<[1], [0], [0], [1], [0, 0, 1, 1], [], []>} : vector<256x32xf32>, vector<32x64xf32>, vector<256x64xf32> -> vector<256x64xf32>
    %c0_12 = arith.constant 0 : index
    %c0_13 = arith.constant 0 : index
    %12 = vector.load %arg4[%c0_12, %c0_13] : memref<1x64xf32, #tpu.memory_space<vmem>>, vector<1x64xf32>
    %13 = vector.broadcast %12 : vector<1x64xf32> to vector<256x64xf32>
    %14 = arith.addf %11, %13 : vector<256x64xf32>
    %cst_14 = arith.constant 2.000000e+01 : f32
    %15 = vector.broadcast %cst_14 : f32 to vector<256x64xf32>
    %16 = arith.cmpf ogt, %14, %15 : vector<256x64xf32>
    %cst_15 = arith.constant 2.000000e+01 : f32
    %17 = vector.broadcast %cst_15 : f32 to vector<256x64xf32>
    %18 = arith.minimumf %14, %17 : vector<256x64xf32>
    %19 = math.exp %18 : vector<256x64xf32>
    %20 = math.log1p %19 : vector<256x64xf32>
    %21 = arith.select %16, %14, %20 : vector<256x64xi1>, vector<256x64xf32>
    %c0_16 = arith.constant 0 : index
    %c0_17 = arith.constant 0 : index
    %22 = vector.load %arg5[%c0_16, %c0_17] : memref<64x33xf32, #tpu.memory_space<vmem>>, vector<64x33xf32>
    %cst_18 = arith.constant dense<0.000000e+00> : vector<256x33xf32>
    %23 = tpu.matmul %21, %22, %cst_18 {dimension_numbers = #tpu.dot_dimension_numbers<[1], [0], [0], [1], [0, 0, 1, 1], [], []>} : vector<256x64xf32>, vector<64x33xf32>, vector<256x33xf32> -> vector<256x33xf32>
    %c0_19 = arith.constant 0 : index
    %c0_20 = arith.constant 0 : index
    %24 = vector.load %arg6[%c0_19, %c0_20] : memref<1x33xf32, #tpu.memory_space<vmem>>, vector<1x33xf32>
    %25 = vector.broadcast %24 : vector<1x33xf32> to vector<256x33xf32>
    %26 = arith.addf %23, %25 : vector<256x33xf32>
    %cst_21 = arith.constant 0.000000e+00 : f32
    %27 = vector.broadcast %cst_21 : f32 to vector<256x33xf32>
    %28 = arith.subf %27, %26 : vector<256x33xf32>
    %29 = math.exp %28 : vector<256x33xf32>
    %cst_22 = arith.constant 1.000000e+00 : f32
    %30 = vector.broadcast %cst_22 : f32 to vector<256x33xf32>
    %31 = arith.addf %30, %29 : vector<256x33xf32>
    %32 = tpu.reciprocal %31 {approx = true} : vector<256x33xf32> -> vector<256x33xf32>
    %cst_23 = arith.constant 1.002000e+00 : f32
    %33 = vector.broadcast %cst_23 : f32 to vector<256x33xf32>
    %34 = arith.mulf %32, %33 : vector<256x33xf32>
    %cst_24 = arith.constant 1.000000e-03 : f32
    %35 = vector.broadcast %cst_24 : f32 to vector<256x33xf32>
    %36 = arith.subf %34, %35 : vector<256x33xf32>
    %37 = tpu.iota {dimensions = array<i32: 1>} : vector<256x33xi32>
    %c0_i32 = arith.constant 0 : i32
    %38 = vector.broadcast %c0_i32 : i32 to vector<256x33xi32>
    %39 = arith.cmpi eq, %37, %38 : vector<256x33xi32>
    %40 = arith.select %39, %26, %36 : vector<256x33xi1>, vector<256x33xf32>
    %c0_25 = arith.constant 0 : index
    %c0_26 = arith.constant 0 : index
    %c0_27 = arith.constant 0 : index
    %41 = vector.load %arg7[%c0_25, %c0_26, %c0_27] : memref<1x256x33xf32, #tpu.memory_space<vmem>>, vector<1x256x33xf32>
    %42 = vector.shape_cast %41 : vector<1x256x33xf32> to vector<256x33xf32>
    %43 = vector.shape_cast %40 : vector<256x33xf32> to vector<1x256x33xf32>
    tpu.vector_store %arg7[%c0_25, %c0_26, %c0_27], %43 {strides = array<i32>} : memref<1x256x33xf32, #tpu.memory_space<vmem>>, vector<1x256x33xf32>,
    return
  }
  func.func @transform_0(%arg0: i32, %arg1: i32) -> (i32, i32, i32, i32) {
    %c0_i32 = arith.constant 0 : i32
    %c0_i32_0 = arith.constant 0 : i32
    %c0_i32_1 = arith.constant 0 : i32
    return %arg0, %c0_i32, %arg1, %c0_i32_0 : i32, i32, i32, i32
  }
  func.func @transform_1(%arg0: i32, %arg1: i32) -> (i32, i32) {
    %c0_i32 = arith.constant 0 : i32
    %c0_i32_0 = arith.constant 0 : i32
    %c0_i32_1 = arith.constant 0 : i32
    return %c0_i32, %c0_i32_0 : i32, i32
  }
  func.func @transform_2(%arg0: i32, %arg1: i32) -> (i32, i32) {
    %c0_i32 = arith.constant 0 : i32
    %c0_i32_0 = arith.constant 0 : i32
    %c0_i32_1 = arith.constant 0 : i32
    return %c0_i32, %c0_i32_0 : i32, i32
  }
  func.func @transform_3(%arg0: i32, %arg1: i32) -> (i32, i32) {
    %c0_i32 = arith.constant 0 : i32
    %c0_i32_0 = arith.constant 0 : i32
    %c0_i32_1 = arith.constant 0 : i32
    return %c0_i32, %c0_i32_0 : i32, i32
  }
  func.func @transform_4(%arg0: i32, %arg1: i32) -> (i32, i32) {
    %c0_i32 = arith.constant 0 : i32
    %c0_i32_0 = arith.constant 0 : i32
    %c0_i32_1 = arith.constant 0 : i32
    return %c0_i32, %c0_i32_0 : i32, i32
  }
  func.func @transform_5(%arg0: i32, %arg1: i32) -> (i32, i32, i32) {
    %c0_i32 = arith.constant 0 : i32
    %c0_i32_0 = arith.constant 0 : i32
    return %arg0, %arg1, %c0_i32 : i32, i32, i32
  }
}

</mosaic_0001>

<bundles_post_ra>
// kernel: tpu_custom_call.1
= control target key start
LH: loop header
LB: loop body
LE: loop exit
PB: predicated region body
PF: predicated region fallthrough
CT: control target
= control target key end

     0   :  { %s2675_s18 = smov 0   ;;  %s2677_s19 = smov 0   ;;  %s3753_s0 = inlined_call_operand.vmem [shape: f32[2,3,256,32], index: 0, kind: input, shape index: {}]   ;;  %s3754_s1 = inlined_call_operand.vmem [shape: f32[32,64], index: 1, kind: input, shape index: {}]   ;;  %s3755_s2 = inlined_call_operand.vmem [shape: f32[1,64], index: 2, kind: input, shape index: {}]   ;;  %s3756_s3 = inlined_call_operand.vmem [shape: f32[64,33], index: 3, kind: input, shape index: {}]   ;;  %s3757_s4 = inlined_call_operand.vmem [shape: f32[1,33], index: 4, kind: input, shape index: {}]   ;;  %s3758_s5 = inlined_call_operand.vmem [shape: f32[2,256,33], index: 5, kind: output, shape index: {}]  }
   0x1   :  { %s2679_s20 = smov 0  }
   0x2 LB: > { %s27_s21 = sadd.s32 1, %s2639_s19  ;;  %p1959_p0 = scmp.ge.s32.totalorder %s2643_s20, 1  ;;  %s2643_s20 = sphi %s2679_s20, %s15_s20   ;;  %s2639_s19 = sphi %s2677_s19, %s3796_s19   ;;  %s2635_s18 = sphi %s2675_s18, %s3795_s18  }
   0x3   : > { %p29_p1 = scmp.ge.s32.totalorder %s27_s21, 2  ;;  %p208_p2 = scmp.lt.s32.totalorder %s2643_s20, 3 }
   0x5   : > { %s3798_s21 = smov (%p29_p1, %s27_s21), 0  ;;  %p209_p3 = pnand %p1959_p0, %p208_p2 }
   0x6   : > { %p245_p4 = scmp.lt.s32.totalorder (!%p209_p3), %s2635_s18, 1 }
   0x7   : > { %212 = sbr.rel (%p209_p3) target bundleno = 593 (0x251), region = 40 }
   0xc   : > { %v461_v0 = vld [vmem:[%s3754_s1 + $0x18] sm:$0xff]  ;;  %v460_v1 = vld [vmem:[%s3754_s1 + $0x10] sm:$0xff]  ;;  %v459_v2 = vld [vmem:[%s3754_s1 + $0x8] sm:$0xff]  ;;  %s3800_s18 = smov (!%p245_p4, %s2635_s18), 1  ;;  %vm469_vm0 = vcmask 261120   ;;  %vm1254_vm1 = vcmask 523264  }
   0xd   : > { %2204 = vmatprep.subr.mxu0 %v461_v0  ;;  %v458_v3 = vld [vmem:[%s3754_s1] sm:$0xff]  ;;  %s2340_s30 = smul.u32 768, %s3800_s18 }
   0xe   : > { %2205 = vmatpush3.msra.mxu0 %v461_v0 }
   0xf   : > { %2206 = vmatprep.subr.mxu0 %v460_v1  ;;  %s2711_s8 = scalar_lea.vmem %s3753_s0, %s2340_s30 }
  0x10   : > { %2207 = vmatpush3.msra.mxu0 %v460_v1  ;;  %v264_v4 = vld [vmem:[%s2711_s8] sm:$0xff]  ;;  %v265_v8 = vld [vmem:[%s2711_s8 + $0x8] sm:$0xff]  ;;  %v266_v12 = vld [vmem:[%s2711_s8 + $0x10] sm:$0xff] }
  0x11   : > { %2208 = vmatprep.subr.mxu0 %v459_v2  ;;  %v1963_v5 = vld [vmem:[%s2711_s8 + $0x100] sm:$0xff]  ;;  %v1964_v9 = vld [vmem:[%s2711_s8 + $0x108] sm:$0xff]  ;;  %v1965_v13 = vld [vmem:[%s2711_s8 + $0x110] sm:$0xff] }
  0x12   : > { %2209 = vmatpush3.msra.mxu0 %v459_v2  ;;  %v1995_v6 = vld [vmem:[%s2711_s8 + $0x200] sm:$0xff]  ;;  %v329_v7 = vadd.f32 %v1963_v5, %v264_v4  ;;  %v1996_v10 = vld [vmem:[%s2711_s8 + $0x208] sm:$0xff]  ;;  %v330_v11 = vadd.f32 %v1964_v9, %v265_v8  ;;  %v1997_v14 = vld [vmem:[%s2711_s8 + $0x210] sm:$0xff]  ;;  %v331_v16 = vadd.f32 %v1965_v13, %v266_v12 }
  0x13   : > { %2210 = vmatprep.subr.mxu0 %v458_v3  ;;  %v267_v17 = vld [vmem:[%s2711_s8 + $0x18] sm:$0xff]  ;;  %v268_v22 = vld [vmem:[%s2711_s8 + $0x20] sm:$0xff]  ;;  %v269_v28 = vld [vmem:[%s2711_s8 + $0x28] sm:$0xff] }
  0x14   : > { %2211 = vmatpush3.msra.mxu0 %v458_v3  ;;  %v394_v15 = vadd.f32 %v1995_v6, %v329_v7  ;;  %v1966_v18 = vld [vmem:[%s2711_s8 + $0x118] sm:$0xff]  ;;  %v395_v20 = vadd.f32 %v1996_v10, %v330_v11  ;;  %v1967_v23 = vld [vmem:[%s2711_s8 + $0x120] sm:$0xff]  ;;  %v396_v26 = vadd.f32 %v1997_v14, %v331_v16  ;;  %v1968_v29 = vld [vmem:[%s2711_s8 + $0x128] sm:$0xff] }
  0x15   : > { %v1998_v19 = vld [vmem:[%s2711_s8 + $0x218] sm:$0xff]  ;;  %v332_v21 = vadd.f32 %v1966_v18, %v267_v17  ;;  %v1999_v24 = vld [vmem:[%s2711_s8 + $0x220] sm:$0xff]  ;;  %v333_v27 = vadd.f32 %v1967_v23, %v268_v22  ;;  %v2000_v30 = vld [vmem:[%s2711_s8 + $0x228] sm:$0xff]  ;;  %v334_v33 = vadd.f32 %v1968_v29, %v269_v28 }
  0x16   : > { %v426_v25 = vmul.f32 0.33333334, %v394_v15  ;;  %v427_v31 = vmul.f32 0.33333334, %v395_v20  ;;  %v270_v34 = vld [vmem:[%s2711_s8 + $0x30] sm:$0xff]  ;;  %v271_v40 = vld [vmem:[%s2711_s8 + $0x38] sm:$0xff] }
  0x17   : > { %v397_v32 = vadd.f32 %v1998_v19, %v332_v21  ;;  %v1969_v35 = vld [vmem:[%s2711_s8 + $0x130] sm:$0xff]  ;;  %v428_v37 = vmul.f32 0.33333334, %v396_v26  ;;  %v398_v38 = vadd.f32 %v1999_v24, %v333_v27  ;;  %v1970_v41 = vld [vmem:[%s2711_s8 + $0x138] sm:$0xff]  ;;  %v399_v43 = vadd.f32 %v2000_v30, %v334_v33  ;;  %v272_v45 = vld [vmem:[%s2711_s8 + $0x40] sm:$0xff] }
  0x18   : > { %v2001_v36 = vld [vmem:[%s2711_s8 + $0x230] sm:$0xff]  ;;  %2212 = vmatprep.mubr.msk.f32.mxu0 %vm469_vm0, %v426_v25  ;;  %v335_v39 = vadd.f32 %v1969_v35, %v270_v34  ;;  %v336_v44 = vadd.f32 %v1970_v41, %v271_v40  ;;  %v1971_v46 = vld [vmem:[%s2711_s8 + $0x140] sm:$0xff]  ;;  %v2002_v49 = vld [vmem:[%s2711_s8 + $0x238] sm:$0xff] }
  0x19   : > { %2213 = vmatmul.mubr.msk.f32.vlgmr.msra.gmra.mxu0 %vm469_vm0, %v427_v31  ;;  %v429_v42 = vmul.f32 0.33333334, %v397_v32  ;;  %v430_v47 = vmul.f32 0.33333334, %v398_v38  ;;  %v337_v50 = vadd.f32 %v1971_v46, %v272_v45  ;;  %v273_v51 = vld [vmem:[%s2711_s8 + $0x48] sm:$0xff]  ;;  %v2003_v53 = vld [vmem:[%s2711_s8 + $0x240] sm:$0xff] }
  0x1a   : > { %2215 = vmatprep.mubr.msk.f32.mxu0 %vm469_vm0, %v428_v37  ;;  %v400_v48 = vadd.f32 %v2001_v36, %v335_v39  ;;  %v1972_v52 = vld [vmem:[%s2711_s8 + $0x148] sm:$0xff]  ;;  %v274_v54 = vld [vmem:[%s2711_s8 + $0x50] sm:$0xff]  ;;  %v431_v56 = vmul.f32 0.33333334, %v399_v43  ;;  %v401_v57 = vadd.f32 %v2002_v49, %v336_v44  ;;  %v275_v63 = vld [vmem:[%s2711_s8 + $0x58] sm:$0xff] }
  0x1b   : > { %v1973_v55 = vld [vmem:[%s2711_s8 + $0x150] sm:$0xff]  ;;  %v338_v58 = vadd.f32 %v1972_v52, %v273_v51  ;;  %v402_v60 = vadd.f32 %v2003_v53, %v337_v50  ;;  %v2004_v61 = vld [vmem:[%s2711_s8 + $0x248] sm:$0xff]  ;;  %v1974_v0 = vld [vmem:[%s2711_s8 + $0x158] sm:$0xff] }
  0x1c   : > { %v432_v59 = vmul.f32 0.33333334, %v400_v48  ;;  %v339_v62 = vadd.f32 %v1973_v55, %v274_v54  ;;  %v2005_v1 = vld [vmem:[%s2711_s8 + $0x250] sm:$0xff]  ;;  %v276_v2 = vld [vmem:[%s2711_s8 + $0x60] sm:$0xff]  ;;  %v433_v4 = vmul.f32 0.33333334, %v401_v57  ;;  %v340_v6 = vadd.f32 %v1974_v0, %v275_v63 }
  0x1d   : > { %2216 = vmatmul.mubr.msk.f32.gmra.mxu0 %vm469_vm0, %v429_v42  ;;  %v1975_v3 = vld [vmem:[%s2711_s8 + $0x160] sm:$0xff]  ;;  %v403_v5 = vadd.f32 %v2004_v61, %v338_v58  ;;  %v434_v7 = vmul.f32 0.33333334, %v402_v60  ;;  %v2006_v9 = vld [vmem:[%s2711_s8 + $0x258] sm:$0xff]  ;;  %v277_v11 = vld [vmem:[%s2711_s8 + $0x68] sm:$0xff] }
  0x1e   : > { %2218 = vmatprep.mubr.msk.f32.mxu0 %vm469_vm0, %v430_v47  ;;  %v404_v8 = vadd.f32 %v2005_v1, %v339_v62  ;;  %v341_v10 = vadd.f32 %v1975_v3, %v276_v2  ;;  %v1976_v12 = vld [vmem:[%s2711_s8 + $0x168] sm:$0xff]  ;;  %v2007_v13 = vld [vmem:[%s2711_s8 + $0x260] sm:$0xff]  ;;  %v278_v14 = vld [vmem:[%s2711_s8 + $0x70] sm:$0xff]  ;;  %v405_v17 = vadd.f32 %v2006_v9, %v340_v6 }
  0x1f   : > { %v1977_v15 = vld [vmem:[%s2711_s8 + $0x170] sm:$0xff]  ;;  %v435_v16 = vmul.f32 0.33333334, %v403_v5  ;;  %v342_v18 = vadd.f32 %v1976_v12, %v277_v11  ;;  %v2008_v21 = vld [vmem:[%s2711_s8 + $0x268] sm:$0xff]  ;;  %v279_v23 = vld [vmem:[%s2711_s8 + $0x78] sm:$0xff] }
  0x20   : > { %v436_v19 = vmul.f32 0.33333334, %v404_v8  ;;  %v406_v20 = vadd.f32 %v2007_v13, %v341_v10  ;;  %v343_v22 = vadd.f32 %v1977_v15, %v278_v14  ;;  %v1978_v24 = vld [vmem:[%s2711_s8 + $0x178] sm:$0xff]  ;;  %v2009_v25 = vld [vmem:[%s2711_s8 + $0x270] sm:$0xff]  ;;  %v280_v26 = vld [vmem:[%s2711_s8 + $0x80] sm:$0xff] }
  0x21   : > { %2219 = vmatmul.mubr.msk.f32.gmra.mxu0 %vm469_vm0, %v431_v56  ;;  %v1979_v27 = vld [vmem:[%s2711_s8 + $0x180] sm:$0xff]  ;;  %v437_v28 = vmul.f32 0.33333334, %v405_v17  ;;  %v407_v29 = vadd.f32 %v2008_v21, %v342_v18  ;;  %v344_v30 = vadd.f32 %v1978_v24, %v279_v23  ;;  %v2010_v33 = vld [vmem:[%s2711_s8 + $0x278] sm:$0xff]  ;;  %v281_v35 = vld [vmem:[%s2711_s8 + $0x88] sm:$0xff] }
  0x22   : > { %2221 = vmatprep.mubr.msk.f32.mxu0 %vm469_vm0, %v432_v59  ;;  %v438_v31 = vmul.f32 0.33333334, %v406_v20  ;;  %v408_v32 = vadd.f32 %v2009_v25, %v343_v22  ;;  %v345_v34 = vadd.f32 %v1979_v27, %v280_v26  ;;  %v1980_v36 = vld [vmem:[%s2711_s8 + $0x188] sm:$0xff]  ;;  %v2011_v37 = vld [vmem:[%s2711_s8 + $0x280] sm:$0xff]  ;;  %v282_v38 = vld [vmem:[%s2711_s8 + $0x90] sm:$0xff] }
  0x23   : > { %v1981_v39 = vld [vmem:[%s2711_s8 + $0x190] sm:$0xff]  ;;  %v439_v40 = vmul.f32 0.33333334, %v407_v29  ;;  %v409_v41 = vadd.f32 %v2010_v33, %v344_v30  ;;  %v346_v42 = vadd.f32 %v1980_v36, %v281_v35  ;;  %v2012_v45 = vld [vmem:[%s2711_s8 + $0x288] sm:$0xff]  ;;  %v283_v47 = vld [vmem:[%s2711_s8 + $0x98] sm:$0xff] }
  0x24   : > { %v440_v43 = vmul.f32 0.33333334, %v408_v32  ;;  %v410_v44 = vadd.f32 %v2011_v37, %v345_v34  ;;  %v347_v46 = vadd.f32 %v1981_v39, %v282_v38  ;;  %v1982_v48 = vld [vmem:[%s2711_s8 + $0x198] sm:$0xff]  ;;  %v2013_v49 = vld [vmem:[%s2711_s8 + $0x290] sm:$0xff]  ;;  %v284_v50 = vld [vmem:[%s2711_s8 + $0xa0] sm:$0xff] }
  0x25   : > { %2222 = vmatmul.mubr.msk.f32.gmra.mxu0 %vm469_vm0, %v433_v4  ;;  %v1983_v51 = vld [vmem:[%s2711_s8 + $0x1a0] sm:$0xff]  ;;  %v441_v52 = vmul.f32 0.33333334, %v409_v41  ;;  %v411_v53 = vadd.f32 %v2012_v45, %v346_v42  ;;  %v348_v54 = vadd.f32 %v1982_v48, %v283_v47  ;;  %v2014_v57 = vld [vmem:[%s2711_s8 + $0x298] sm:$0xff]  ;;  %v285_v59 = vld [vmem:[%s2711_s8 + $0xa8] sm:$0xff] }
  0x26   : > { %2224 = vmatprep.mubr.msk.f32.mxu0 %vm469_vm0, %v434_v7  ;;  %v442_v55 = vmul.f32 0.33333334, %v410_v44  ;;  %v412_v56 = vadd.f32 %v2013_v49, %v347_v46  ;;  %v349_v58 = vadd.f32 %v1983_v51, %v284_v50  ;;  %v1984_v60 = vld [vmem:[%s2711_s8 + $0x1a8] sm:$0xff]  ;;  %v2015_v61 = vld [vmem:[%s2711_s8 + $0x2a0] sm:$0xff]  ;;  %v286_v62 = vld [vmem:[%s2711_s8 + $0xb0] sm:$0xff] }
  0x27   : > { %v1985_v63 = vld [vmem:[%s2711_s8 + $0x1b0] sm:$0xff]  ;;  %v443_v0 = vmul.f32 0.33333334, %v411_v53  ;;  %v413_v1 = vadd.f32 %v2014_v57, %v348_v54  ;;  %v350_v2 = vadd.f32 %v1984_v60, %v285_v59  ;;  %v2016_v5 = vld [vmem:[%s2711_s8 + $0x2a8] sm:$0xff]  ;;  %v287_v7 = vld [vmem:[%s2711_s8 + $0xb8] sm:$0xff] }
  0x28   : > { %v444_v3 = vmul.f32 0.33333334, %v412_v56  ;;  %v414_v4 = vadd.f32 %v2015_v61, %v349_v58  ;;  %v351_v6 = vadd.f32 %v1985_v63, %v286_v62  ;;  %v1986_v8 = vld [vmem:[%s2711_s8 + $0x1b8] sm:$0xff]  ;;  %v2017_v9 = vld [vmem:[%s2711_s8 + $0x2b0] sm:$0xff]  ;;  %v288_v10 = vld [vmem:[%s2711_s8 + $0xc0] sm:$0xff] }
  0x29   : > { %2225 = vmatmul.mubr.msk.f32.gmra.mxu0 %vm469_vm0, %v435_v16  ;;  %v1987_v11 = vld [vmem:[%s2711_s8 + $0x1c0] sm:$0xff]  ;;  %v445_v12 = vmul.f32 0.33333334, %v413_v1  ;;  %v415_v13 = vadd.f32 %v2016_v5, %v350_v2  ;;  %v352_v14 = vadd.f32 %v1986_v8, %v287_v7  ;;  %v2018_v17 = vld [vmem:[%s2711_s8 + $0x2b8] sm:$0xff]  ;;  %v1988_v20 = vld [vmem:[%s2711_s8 + $0x1c8] sm:$0xff] }
  0x2a   : > { %2227 = vmatprep.mubr.msk.f32.mxu0 %vm469_vm0, %v436_v19  ;;  %v446_v15 = vmul.f32 0.33333334, %v414_v4  ;;  %v416_v16 = vadd.f32 %v2017_v9, %v351_v6  ;;  %v353_v18 = vadd.f32 %v1987_v11, %v288_v10  ;;  %v289_v19 = vld [vmem:[%s2711_s8 + $0xc8] sm:$0xff]  ;;  %v2019_v21 = vld [vmem:[%s2711_s8 + $0x2c0] sm:$0xff]  ;;  %v290_v22 = vld [vmem:[%s2711_s8 + $0xd0] sm:$0xff] }
  0x2b   : > { %v1989_v23 = vld [vmem:[%s2711_s8 + $0x1d0] sm:$0xff]  ;;  %v447_v24 = vmul.f32 0.33333334, %v415_v13  ;;  %v417_v25 = vadd.f32 %v2018_v17, %v352_v14  ;;  %v354_v26 = vadd.f32 %v1988_v20, %v289_v19  ;;  %v2020_v29 = vld [vmem:[%s2711_s8 + $0x2c8] sm:$0xff]  ;;  %v1990_v32 = vld [vmem:[%s2711_s8 + $0x1d8] sm:$0xff] }
  0x2c   : > { %v448_v27 = vmul.f32 0.33333334, %v416_v16  ;;  %v355_v30 = vadd.f32 %v1989_v23, %v290_v22  ;;  %v2021_v33 = vld [vmem:[%s2711_s8 + $0x2d0] sm:$0xff]  ;;  %v292_v34 = vld [vmem:[%s2711_s8 + $0xe0] sm:$0xff]  ;;  %v2022_v41 = vld [vmem:[%s2711_s8 + $0x2d8] sm:$0xff] }
  0x2d   : > { %2228 = vmatmul.mubr.msk.f32.gmra.mxu0 %vm469_vm0, %v437_v28  ;;  %v418_v28 = vadd.f32 %v2019_v21, %v353_v18  ;;  %v1991_v35 = vld [vmem:[%s2711_s8 + $0x1e0] sm:$0xff]  ;;  %v449_v36 = vmul.f32 0.33333334, %v417_v25  ;;  %v419_v37 = vadd.f32 %v2020_v29, %v354_v26  ;;  %v1992_v44 = vld [vmem:[%s2711_s8 + $0x1e8] sm:$0xff]  ;;  %v294_v46 = vld [vmem:[%s2711_s8 + $0xf0] sm:$0xff] }
  0x2e   : > { %2230 = vmatprep.mubr.msk.f32.mxu0 %vm469_vm0, %v438_v31  ;;  %v291_v31 = vld [vmem:[%s2711_s8 + $0xd8] sm:$0xff]  ;;  %v357_v42 = vadd.f32 %v1991_v35, %v292_v34  ;;  %v2023_v45 = vld [vmem:[%s2711_s8 + $0x2e0] sm:$0xff]  ;;  %v1993_v47 = vld [vmem:[%s2711_s8 + $0x1f0] sm:$0xff] }
  0x2f   : > { %v356_v38 = vadd.f32 %v1990_v32, %v291_v31  ;;  %v450_v39 = vmul.f32 0.33333334, %v418_v28  ;;  %v451_v48 = vmul.f32 0.33333334, %v419_v37  ;;  %v2024_v53 = vld [vmem:[%s2711_s8 + $0x2e8] sm:$0xff]  ;;  %v359_v54 = vadd.f32 %v1993_v47, %v294_v46  ;;  %v1994_v56 = vld [vmem:[%s2711_s8 + $0x1f8] sm:$0xff] }
  0x30   : > { %v2025_v57 = vld [vmem:[%s2711_s8 + $0x2f0] sm:$0xff]  ;;  %v2026_v63 = vld [vmem:[%s2711_s8 + $0x2f8] sm:$0xff]  ;;  %v1244_v6 = vld [vmem:[%s3756_s3 + $0x28] sm:$0xff] }
  0x31   : > { %2231 = vmatmul.mubr.msk.f32.gmra.mxu0 %vm469_vm0, %v439_v40  ;;  %v420_v40 = vadd.f32 %v2021_v33, %v355_v30  ;;  %v421_v49 = vadd.f32 %v2022_v41, %v356_v38  ;;  %v424_v62 = vadd.f32 %v2025_v57, %v359_v54  ;;  %v1246_v4 = vld [vmem:[%s3756_s3 + $0x38] sm:$0xff]  ;;  %v1245_v5 = vld [vmem:[%s3756_s3 + $0x30] sm:$0xff]  ;;  %v1243_v7 = vld [vmem:[%s3756_s3 + $0x20] sm:$0xff] }
  0x32   : > { %2233 = vmatprep.mubr.msk.f32.mxu0 %vm469_vm0, %v440_v43  ;;  %v293_v43 = vld [vmem:[%s2711_s8 + $0xe8] sm:$0xff]  ;;  %2260 = vmatprep.subr.mxu0 %v1246_v4  ;;  %v1242_v8 = vld [vmem:[%s3756_s3 + $0x18] sm:$0xff]  ;;  %v1241_v9 = vld [vmem:[%s3756_s3 + $0x10] sm:$0xff] }
  0x33   : > { %v358_v50 = vadd.f32 %v1992_v44, %v293_v43  ;;  %v452_v51 = vmul.f32 0.33333334, %v420_v40  ;;  %v453_v58 = vmul.f32 0.33333334, %v421_v49  ;;  %v456_v2 = vmul.f32 0.33333334, %v424_v62  ;;  %2324 = vmatprep.subr.mxu1 %v1246_v4  ;;  %2261 = vmatpush3.msra.mxu0 %v1246_v4 }
  0x34   : > { %2332 = vmatpush3.msra.mxu1 %v1246_v4  ;;  %2262 = vmatprep.subr.mxu0 %v1245_v5  ;;  %v1240_v10 = vld [vmem:[%s3756_s3 + $0x8] sm:$0xff]  ;;  %v1239_v11 = vld [vmem:[%s3756_s3] sm:$0xff] }
  0x35   : > { %2234 = vmatmul.mubr.msk.f32.gmra.mxu0 %vm469_vm0, %v441_v52  ;;  %v422_v52 = vadd.f32 %v2023_v45, %v357_v42  ;;  %v423_v59 = vadd.f32 %v2024_v53, %v358_v50  ;;  %2325 = vmatprep.subr.mxu1 %v1245_v5 }
  0x36   : > { %2236 = vmatprep.mubr.msk.f32.mxu0 %vm469_vm0, %v442_v55  ;;  %v295_v55 = vld [vmem:[%s2711_s8 + $0xf8] sm:$0xff]  ;;  %2263 = vmatpush3.msra.mxu0 %v1245_v5  ;;  %s2127_s8 = sshll.u32 %s3800_s18, 8 }
  0x37   : > { %v360_v60 = vadd.f32 %v1994_v56, %v295_v55  ;;  %v454_v61 = vmul.f32 0.33333334, %v422_v52  ;;  %2333 = vmatpush3.msra.mxu1 %v1245_v5  ;;  %2264 = vmatprep.subr.mxu0 %v1244_v6  ;;  %s3489_s11 = scalar_lea.vmem %s3758_s5, %s2127_s8 }
  0x38   : > { %2326 = vmatprep.subr.mxu1 %v1244_v6  ;;  %2265 = vmatpush3.msra.mxu0 %v1244_v6 }
  0x39   : > { %2237 = vmatmul.mubr.msk.f32.gmra.mxu0 %vm469_vm0, %v443_v0  ;;  %v455_v0 = vmul.f32 0.33333334, %v423_v59  ;;  %v425_v1 = vadd.f32 %v2026_v63, %v360_v60  ;;  %2334 = vmatpush3.msra.mxu1 %v1244_v6 }
  0x3a   : > { %2239 = vmatprep.mubr.msk.f32.mxu0 %vm469_vm0, %v444_v3  ;;  %2266 = vmatprep.subr.mxu0 %v1243_v7 }
  0x3b   : > { %v457_v3 = vmul.f32 0.33333334, %v425_v1  ;;  %2327 = vmatprep.subr.mxu1 %v1243_v7  ;;  %2267 = vmatpush3.msra.mxu0 %v1243_v7 }
  0x3c   : > { %2335 = vmatpush3.msra.mxu1 %v1243_v7  ;;  %2268 = vmatprep.subr.mxu0 %v1242_v8 }
  0x3d   : > { %2240 = vmatmul.mubr.msk.f32.gmra.mxu0 %vm469_vm0, %v445_v12  ;;  %2328 = vmatprep.subr.mxu1 %v1242_v8  ;;  %v2868_v12 = vld [vmem:[%s3755_s2] ss:$0 sm:$0xff] }
  0x3e   : > { %2242 = vmatprep.mubr.msk.f32.mxu0 %vm469_vm0, %v446_v15  ;;  %2269 = vmatpush3.msra.mxu0 %v1242_v8 }
  0x3f   : > { %2336 = vmatpush3.msra.mxu1 %v1242_v8  ;;  %2270 = vmatprep.subr.mxu0 %v1241_v9 }
  0x40   : > { %2329 = vmatprep.subr.mxu1 %v1241_v9  ;;  %2271 = vmatpush3.msra.mxu0 %v1241_v9 }
  0x41   : > { %2243 = vmatmul.mubr.msk.f32.gmra.mxu0 %vm469_vm0, %v447_v24  ;;  %2337 = vmatpush3.msra.mxu1 %v1241_v9 }
  0x42   : > { %2245 = vmatprep.mubr.msk.f32.mxu0 %vm469_vm0, %v448_v27  ;;  %2272 = vmatprep.subr.mxu0 %v1240_v10 }
  0x43   : > { %2330 = vmatprep.subr.mxu1 %v1240_v10  ;;  %2273 = vmatpush3.msra.mxu0 %v1240_v10 }
  0x44   : > { %2338 = vmatpush3.msra.mxu1 %v1240_v10  ;;  %2274 = vmatprep.subr.mxu0 %v1239_v11 }
  0x45   : > { %2246 = vmatmul.mubr.msk.f32.gmra.mxu0 %vm469_vm0, %v449_v36  ;;  %2331 = vmatprep.subr.mxu1 %v1239_v11 }
  0x46   : > { %2248 = vmatprep.mubr.msk.f32.mxu0 %vm469_vm0, %v450_v39  ;;  %2275 = vmatpush3.msra.mxu0 %v1239_v11 }
  0x47   : > { %2339 = vmatpush3.msra.mxu1 %v1239_v11 }
  0x49   : > { %2249 = vmatmul.mubr.msk.f32.gmra.mxu0 %vm469_vm0, %v451_v48 }
  0x4a   : > { %2251 = vmatprep.mubr.msk.f32.mxu0 %vm469_vm0, %v452_v51 }
  0x4d   : > { %2252 = vmatmul.mubr.msk.f32.gmra.mxu0 %vm469_vm0, %v453_v58 }
  0x4e   : > { %2254 = vmatprep.mubr.msk.f32.mxu0 %vm469_vm0, %v454_v61 }
  0x51   : > { %2255 = vmatmul.mubr.msk.f32.gmra.mxu0 %vm469_vm0, %v455_v0 }
  0x52   : > { %2257 = vmatprep.mubr.msk.f32.mxu0 %vm469_vm0, %v456_v2 }
  0x55   : > { %2258 = vmatmul.mubr.msk.f32.gmra.mxu0 %vm469_vm0, %v457_v3 }
  0xd9   : > { %v2214_v13 = vpop.f32.mrf.mxu0 }
  0xda   : > { %v2871_v14 = vadd.f32 %v2214_v13, %v2868_v12 }
  0xdb   : > { %v632_v15 = vpop.f32.mrf.mxu0 }
  0xdc   : > { %v824_v16 = vmin.f32 %v2871_v14, 20.0  ;;  %v2875_v17 = vadd.f32 %v2868_v12, %v632_v15  ;;  %vm792_vm3 = vcmp.gt.f32.partialorder %v2871_v14, 20.0 }
  0xdd   : > { %v2217_v18 = vpop.f32.mrf.mxu0 }
  0xde   : > { %v857_v19 = vmul.f32 1.442695, %v824_v16  ;;  %v823_v20 = vmin.f32 %v2875_v17, 20.0  ;;  %v2879_v21 = vadd.f32 %v2217_v18, %v2868_v12  ;;  %vm791_vm2 = vcmp.gt.f32.partialorder %v2875_v17, 20.0 }
  0xdf   : > { %v642_v22 = vpop.f32.mrf.mxu0 }
  0xe0   : > { %2365 = vpow2.f32 %v857_v19  ;;  %v855_v23 = vmul.f32 1.442695, %v823_v20  ;;  %v2882_v24 = vadd.f32 %v2868_v12, %v642_v22  ;;  %v826_v26 = vmin.f32 %v2879_v21, 20.0 }
  0xe1   : > { %v2220_v25 = vpop.f32.mrf.mxu0  ;;  %vm794_vm8 = vcmp.gt.f32.partialorder %v2879_v21, 20.0 }
  0xe2   : > { %2367 = vpow2.f32 %v855_v23  ;;  %v825_v27 = vmin.f32 %v2882_v24, 20.0  ;;  %v861_v31 = vmul.f32 1.442695, %v826_v26  ;;  %v2894_v40 = vadd.f32 %v2220_v25, %v2868_v12 }
  0xe3   : > { %v652_v28 = vpop.f32.mrf.mxu0  ;;  %vm793_vm5 = vcmp.gt.f32.partialorder %v2882_v24, 20.0 }
  0xe4   : > { %v859_v29 = vmul.f32 1.442695, %v825_v27  ;;  %v2887_v32 = vadd.f32 %v2868_v12, %v652_v28  ;;  %v828_v48 = vmin.f32 %v2894_v40, 20.0  ;;  %vm796_vm12 = vcmp.gt.f32.partialorder %v2894_v40, 20.0 }
  0xe5   : > { %v2223_v30 = vpop.f32.mrf.mxu0 }
  0xe6   : > { %2369 = vpow2.f32 %v859_v29  ;;  %v827_v35 = vmin.f32 %v2887_v32, 20.0  ;;  %v2897_v42 = vadd.f32 %v2223_v30, %v2868_v12  ;;  %v865_v60 = vmul.f32 1.442695, %v828_v48 }
  0xe7   : > { %v662_v33 = vpop.f32.mrf.mxu0  ;;  %2371 = vpow2.f32 %v861_v31  ;;  %vm795_vm10 = vcmp.gt.f32.partialorder %v2887_v32, 20.0 }
  0xe8   : > { %v863_v41 = vmul.f32 1.442695, %v827_v35  ;;  %v2902_v45 = vadd.f32 %v2868_v12, %v662_v33  ;;  %v830_v50 = vmin.f32 %v2897_v42, 20.0  ;;  %vm798_vm15 = vcmp.gt.f32.partialorder %v2897_v42, 20.0 }
  0xe9   : > { %v2226_v34 = vpop.f32.mrf.mxu0 }
  0xea   : > { %v2905_v46 = vadd.f32 %v2226_v34, %v2868_v12  ;;  %v829_v54 = vmin.f32 %v2902_v45, 20.0  ;;  %v869_v63 = vmul.f32 1.442695, %v830_v50  ;;  %vm797_vm14 = vcmp.gt.f32.partialorder %v2902_v45, 20.0 }
  0xeb   : > { %v672_v36 = vpop.f32.mrf.mxu0 }
  0xec   : > { %v2909_v49 = vadd.f32 %v2868_v12, %v672_v36  ;;  %v832_v56 = vmin.f32 %v2905_v46, 20.0  ;;  %v867_v3 = vmul.f32 1.442695, %v829_v54 }
  0xed   : > { %v2890_v37 = vpop.eup %2365  ;;  %v2229_v38 = vpop.f32.mrf.mxu0 }
  0xee   : > { %v928_v39 = vadd.f32 1.0, %v2890_v37  ;;  %v2917_v55 = vadd.f32 %v2229_v38, %v2868_v12  ;;  %v831_v61 = vmin.f32 %v2909_v49, 20.0  ;;  %v931_v6 = vmul.f32 -0.5, %v2890_v37 }
  0xef   : > { %v682_v43 = vpop.f32.mrf.mxu0  ;;  %v2899_v44 = vpop.eup %2367  ;;  %v873_v7 = vmul.f32 1.442695, %v832_v56  ;;  %v934_v15 = vand.u32 2147483647, %v2890_v37 }
  0xf0   : > { %2373 = vlog2.f32 %v928_v39  ;;  %v919_v52 = vadd.f32 1.0, %v2899_v44  ;;  %v2921_v57 = vadd.f32 %v2868_v12, %v682_v43  ;;  %v834_v4 = vmin.f32 %v2917_v55, 20.0 }
  0xf1   : > { %v2232_v47 = vpop.f32.mrf.mxu0  ;;  %2375 = vpow2.f32 %v863_v41  ;;  %v871_v10 = vmul.f32 1.442695, %v831_v61  ;;  %v922_v13 = vmul.f32 -0.5, %v2899_v44  ;;  %v932_v25 = vadd.f32 1.0, %v931_v6 }
  0xf2   : > { %v2926_v62 = vadd.f32 %v2232_v47, %v2868_v12  ;;  %2377 = vlog2.f32 %v919_v52  ;;  %v833_v8 = vmin.f32 %v2921_v57, 20.0  ;;  %v877_v20 = vmul.f32 1.442695, %v834_v4 }
  0xf3   : > { %v692_v51 = vpop.f32.mrf.mxu0  ;;  %v2913_v53 = vpop.eup %2369  ;;  %v923_v30 = vadd.f32 1.0, %v922_v13  ;;  %v925_v35 = vand.u32 2147483647, %v2899_v44  ;;  %v933_v47 = vmul.f32 %v2890_v37, %v932_v25  ;;  %vm2960_vm4 = vcmp.lt.f32.partialorder %v934_v15, 0.0004427343 }
  0xf4   : > { %v937_v59 = vadd.f32 1.0, %v2913_v53  ;;  %v2929_v0 = vadd.f32 %v2868_v12, %v692_v51  ;;  %v2931_v2 = vpop.eup %2371  ;;  %v836_v11 = vmin.f32 %v2926_v62, 20.0  ;;  %v875_v26 = vmul.f32 1.442695, %v833_v8 }
  0xf5   : > { %v2235_v58 = vpop.f32.mrf.mxu0  ;;  %v946_v19 = vadd.f32 1.0, %v2931_v2  ;;  %v940_v28 = vmul.f32 -0.5, %v2913_v53  ;;  %v943_v36 = vand.u32 2147483647, %v2913_v53  ;;  %v924_v56 = vmul.f32 %v2899_v44, %v923_v30 }
  0xf6   : > { %v2935_v5 = vadd.f32 %v2235_v58, %v2868_v12  ;;  %2379 = vlog2.f32 %v937_v59  ;;  %v835_v16 = vmin.f32 %v2929_v0, 20.0  ;;  %v881_v29 = vmul.f32 1.442695, %v836_v11 }
  0xf7   : > { %v702_v1 = vpop.f32.mrf.mxu0  ;;  %2381 = vpow2.f32 %v865_v60  ;;  %v941_v51 = vadd.f32 1.0, %v940_v28  ;;  %vm2969_vm6 = vcmp.lt.f32.partialorder %v925_v35, 0.0004427343  ;;  %vm2973_vm7 = vcmp.lt.f32.partialorder %v943_v36, 0.0004427343 }
  0xf8   : > { %2383 = vpow2.f32 %v869_v63  ;;  %v838_v22 = vmin.f32 %v2935_v5, 20.0  ;;  %v2946_v23 = vadd.f32 %v2868_v12, %v702_v1  ;;  %v879_v33 = vmul.f32 1.442695, %v835_v16 }
  0xf9   : > { %v2238_v9 = vpop.f32.mrf.mxu0  ;;  %2385 = vpow2.f32 %v867_v3  ;;  %v949_v8 = vmul.f32 -0.5, %v2931_v2  ;;  %v952_v15 = vand.u32 2147483647, %v2931_v2 }
  0xfa   : > { %2387 = vpow2.f32 %v873_v7  ;;  %v885_v39 = vmul.f32 1.442695, %v838_v22  ;;  %v837_v41 = vmin.f32 %v2946_v23, 20.0  ;;  %v2957_v43 = vadd.f32 %v2238_v9, %v2868_v12 }
  0xfb   : > { %v712_v18 = vpop.f32.mrf.mxu0  ;;  %2389 = vpow2.f32 %v871_v10  ;;  %v942_v7 = vmul.f32 %v2913_v53, %v941_v51  ;;  %v950_v35 = vadd.f32 1.0, %v949_v8  ;;  %vm953_vm9 = vcmp.lt.f32.partialorder %v952_v15, 0.0004427343 }
  0xfc   : > { %2391 = vlog2.f32 %v946_v19  ;;  %v2966_v54 = vadd.f32 %v2868_v12, %v712_v18  ;;  %v883_v63 = vmul.f32 1.442695, %v837_v41  ;;  %v840_v1 = vmin.f32 %v2957_v43, 20.0 }
  0xfd   : > { %v2241_v27 = vpop.f32.mrf.mxu0  ;;  %v2374_v31 = vpop.eup %2373  ;;  %2393 = vpow2.f32 %v877_v20 }
  0xfe   : > { %v2952_v38 = vpop.eup %2375  ;;  %2395 = vpow2.f32 %v875_v26  ;;  %v930_v52 = vmul.f32 0.6931472, %v2374_v31  ;;  %v2980_v3 = vadd.f32 %v2241_v27, %v2868_v12  ;;  %v839_v11 = vmin.f32 %v2966_v54, 20.0 }
  0xff   : > { %v722_v34 = vpop.f32.mrf.mxu0  ;;  %2397 = vpow2.f32 %v881_v29  ;;  %v955_v60 = vadd.f32 1.0, %v2952_v38  ;;  %v2378_v61 = vpop.eup %2377  ;;  %v889_v25 = vmul.f32 1.442695, %v840_v1  ;;  %v958_v41 = vmul.f32 -0.5, %v2952_v38 }
 0x100   : > { %2399 = vpow2.f32 %v879_v33  ;;  %v2983_v44 = vadd.f32 %v2868_v12, %v722_v34  ;;  %v921_v4 = vmul.f32 0.6931472, %v2378_v61  ;;  %v936_v10 = vsel %vm2960_vm4, %v933_v47, %v930_v52 }
 0x101   : > { %v2244_v50 = vpop.f32.mrf.mxu0  ;;  %2401 = vpow2.f32 %v885_v39  ;;  %v842_v26 = vmin.f32 %v2980_v3, 20.0  ;;  %v1208_v30 = vsel %vm792_vm3, %v2871_v14, %v936_v10  ;;  %vm799_vm3 = vcmp.gt.f32.partialorder %v2909_v49, 20.0 }
 0x102   : > { %v2991_v13 = vadd.f32 %v2244_v50, %v2868_v12  ;;  %v927_v53 = vsel %vm2969_vm6, %v924_v56, %v921_v4  ;;  %2403 = vlog2.f32 %v955_v60  ;;  %v841_v31 = vmin.f32 %v2983_v44, 20.0 }
 0x103   : > { %v732_v58 = vpop.f32.mrf.mxu0  ;;  %v2380_v9 = vpop.eup %2379  ;;  %v1207_v27 = vsel %vm791_vm2, %v2875_v17, %v927_v53  ;;  %v887_v17 = vmul.f32 1.442695, %v839_v11  ;;  %2405 = vpow2.f32 %v883_v63  ;;  %v951_v63 = vmul.f32 %v2931_v2, %v950_v35 }
 0x104   : > { %v2994_v16 = vpop.eup %2381  ;;  %v2997_v18 = vadd.f32 %v2868_v12, %v732_v58  ;;  %v939_v20 = vmul.f32 0.6931472, %v2380_v9  ;;  %2276 = vmatprep.mubr.msk.f32.mxu0 %vm1254_vm1, %v1207_v27  ;;  %v844_v39 = vmin.f32 %v2991_v13, 20.0  ;;  %2407 = vpow2.f32 %v889_v25 }
 0x105   : > { %v2247_v6 = vpop.f32.mrf.mxu0  ;;  %v3001_v22 = vpop.eup %2383  ;;  %2277 = vmatmul.mubr.msk.f32.vlgmr.msra.gmra.mxu0 %vm1254_vm1, %v1208_v30  ;;  %v964_v52 = vadd.f32 1.0, %v2994_v16  ;;  %v891_v59 = vmul.f32 1.442695, %v841_v31  ;;  %2409 = vpow2.f32 %v887_v17  ;;  %v961_v27 = vand.u32 2147483647, %v2952_v38 }
 0x106   : > { %v3008_v28 = vadd.f32 %v2247_v6, %v2868_v12  ;;  %v3010_v29 = vpop.eup %2385  ;;  %v945_v33 = vsel %vm2973_vm7, %v942_v7, %v939_v20  ;;  %v843_v48 = vmin.f32 %v2997_v18, 20.0  ;;  %v897_v6 = vmul.f32 1.442695, %v844_v39 }
 0x107   : > { %v742_v19 = vpop.f32.mrf.mxu0  ;;  %v3019_v36 = vpop.eup %2387  ;;  %v1209_v14 = vsel %vm793_vm5, %v2882_v24, %v945_v33  ;;  %v893_v24 = vmul.f32 1.442695, %v842_v26  ;;  %v959_v7 = vadd.f32 1.0, %v958_v41  ;;  %2411 = vlog2.f32 %v964_v52 }
 0x108   : > { %v3027_v47 = vpop.eup %2389  ;;  %v3031_v50 = vadd.f32 %v2868_v12, %v742_v19  ;;  %2279 = vmatprep.mubr.msk.f32.mxu1 %vm1254_vm1, %v1209_v14  ;;  %v846_v58 = vmin.f32 %v3008_v28, 20.0  ;;  %v895_v9 = vmul.f32 1.442695, %v843_v48  ;;  %v967_v33 = vmul.f32 -0.5, %v2994_v16 }
 0x109   : > { %v2250_v34 = vpop.f32.mrf.mxu0  ;;  %v2392_v56 = vpop.eup %2391  ;;  %2413 = vpow2.f32 %v893_v24  ;;  %v960_v35 = vmul.f32 %v2952_v38, %v959_v7  ;;  %v982_v41 = vadd.f32 1.0, %v3001_v22  ;;  %vm962_vm11 = vcmp.lt.f32.partialorder %v961_v27, 0.0004427343 }
 0x10a   : > { %v3037_v37 = vpop.eup %2393  ;;  %v3040_v60 = vadd.f32 %v2250_v34, %v2868_v12  ;;  %v948_v61 = vmul.f32 0.6931472, %v2392_v56  ;;  %v845_v10 = vmin.f32 %v3031_v50, 20.0  ;;  %v901_v20 = vmul.f32 1.442695, %v846_v58 }
 0x10b   : > { %v752_v51 = vpop.f32.mrf.mxu0  ;;  %v3043_v4 = vpop.eup %2395  ;;  %2415 = vpow2.f32 %v891_v59  ;;  %v968_v24 = vadd.f32 1.0, %v967_v33  ;;  %v976_v58 = vmul.f32 -0.5, %v3010_v29  ;;  %v970_v59 = vand.u32 2147483647, %v2994_v16 }
 0x10c   : > { %v3045_v8 = vpop.eup %2397  ;;  %v954_v11 = vsel %vm953_vm9, %v951_v63, %v948_v61  ;;  %v3054_v25 = vadd.f32 %v2868_v12, %v752_v51  ;;  %v848_v26 = vmin.f32 %v3040_v60, 20.0  ;;  %2417 = vpow2.f32 %v897_v6 }
 0x10d   : > { %v2253_v1 = vpop.f32.mrf.mxu0  ;;  %v3048_v19 = vpop.eup %2399  ;;  %v1210_v2 = vsel %vm794_vm8, %v2879_v21, %v954_v11  ;;  %v973_v21 = vadd.f32 1.0, %v3010_v29  ;;  %2419 = vpow2.f32 %v895_v9  ;;  %v899_v34 = vmul.f32 1.442695, %v845_v10 }
 0x10e   : > { %v3056_v15 = vpop.eup %2401  ;;  %2280 = vmatmul.mubr.msk.f32.vlgmr.msra.gmra.mxu1 %vm1254_vm1, %v1210_v2  ;;  %v3062_v31 = vadd.f32 %v2253_v1, %v2868_v12  ;;  %2421 = vpow2.f32 %v901_v20  ;;  %v847_v39 = vmin.f32 %v3054_v25, 20.0  ;;  %v905_v48 = vmul.f32 1.442695, %v848_v26 }
 0x10f   : > { %v762_v53 = vpop.f32.mrf.mxu0  ;;  %v2404_v17 = vpop.eup %2403  ;;  %2423 = vlog2.f32 %v973_v21  ;;  %v991_v9 = vadd.f32 1.0, %v3027_v47  ;;  %v985_v11 = vmul.f32 -0.5, %v3001_v22  ;;  %v969_v2 = vmul.f32 %v2994_v16, %v968_v24 }
 0x110   : > { %v3070_v14 = vadd.f32 %v2868_v12, %v762_v53  ;;  %v957_v51 = vmul.f32 0.6931472, %v2404_v17  ;;  %v850_v56 = vmin.f32 %v3062_v31, 20.0  ;;  %2425 = vlog2.f32 %v982_v41  ;;  %v3079_v63 = vpop.eup %2405 }
 0x111   : > { %v2256_v30 = vpop.f32.mrf.mxu0  ;;  %2427 = vpow2.f32 %v899_v34  ;;  %v903_v1 = vmul.f32 1.442695, %v847_v39  ;;  %v3086_v10 = vpop.eup %2407  ;;  %v977_v26 = vadd.f32 1.0, %v976_v58  ;;  %v1000_v21 = vadd.f32 1.0, %v3019_v36 }
 0x112   : > { %v963_v38 = vsel %vm962_vm11, %v960_v35, %v957_v51  ;;  %v3077_v61 = vadd.f32 %v2256_v30, %v2868_v12  ;;  %v849_v7 = vmin.f32 %v3070_v14, 20.0  ;;  %2429 = vpow2.f32 %v905_v48  ;;  %v3093_v27 = vpop.eup %2409 }
 0x113   : > { %v772_v52 = vpop.f32.mrf.mxu0  ;;  %v1211_v6 = vsel %vm795_vm10, %v2887_v32, %v963_v38  ;;  %v909_v20 = vmul.f32 1.442695, %v850_v56  ;;  %v979_v32 = vand.u32 2147483647, %v3010_v29  ;;  %2431 = vlog2.f32 %v991_v9 }
 0x114   : > { %2282 = vmatprep.mubr.msk.f32.mxu1 %vm1254_vm1, %v1211_v6  ;;  %v852_v30 = vmin.f32 %v3077_v61, 20.0  ;;  %v3097_v33 = vadd.f32 %v2868_v12, %v772_v52  ;;  %v2412_v34 = vpop.eup %2411  ;;  %2433 = vpow2.f32 %v903_v1  ;;  %vm3100_vm13 = vcmp.lt.f32.partialorder %v970_v59, 0.0004427343 }
 0x115   : > { %v2259_v53 = vpop.f32.mrf.mxu0  ;;  %v907_v16 = vmul.f32 1.442695, %v849_v7  ;;  %v966_v41 = vmul.f32 0.6931472, %v2412_v34  ;;  %v986_v48 = vadd.f32 1.0, %v985_v11  ;;  %v994_v51 = vmul.f32 -0.5, %v3027_v47 }
 0x116   : > { %v3105_v17 = vadd.f32 %v2259_v53, %v2868_v12  ;;  %v3107_v39 = vpop.eup %2413  ;;  %2435 = vlog2.f32 %v1000_v21  ;;  %v978_v56 = vmul.f32 %v3010_v29, %v977_v26  ;;  %vm3115_vm0 = vcmp.lt.f32.partialorder %v979_v32, 0.0004427343 }
 0x117   : > { %2437 = vpow2.f32 %v909_v20  ;;  %v988_v58 = vand.u32 2147483647, %v3001_v22  ;;  %v972_v59 = vsel %vm3100_vm13, %v969_v2, %v966_v41  ;;  %v913_v1 = vmul.f32 1.442695, %v852_v30  ;;  %v782_v7 = vpop.f32.mrf.mxu0 }
 0x118   : > { %v3111_v52 = vpop.eup %2415  ;;  %v851_v6 = vmin.f32 %v3097_v33, 20.0  ;;  %v1009_v9 = vadd.f32 1.0, %v3043_v4  ;;  %v1212_v29 = vsel %vm796_vm12, %v2894_v40, %v972_v59  ;;  %2439 = vpow2.f32 %v907_v16 }
 0x119   : > { %v3120_v38 = vpop.eup %2417  ;;  %v997_v53 = vand.u32 2147483647, %v3027_v47  ;;  %v854_v20 = vmin.f32 %v3105_v17, 20.0  ;;  %2283 = vmatmul.mubr.msk.f32.gmra.mxu1 %vm1254_vm1, %v1212_v29  ;;  %v987_v2 = vmul.f32 %v3001_v22, %v986_v48  ;;  %v995_v32 = vadd.f32 1.0, %v994_v51 }
 0x11a   : > { %v3126_v11 = vpop.eup %2419  ;;  %v1003_v30 = vmul.f32 -0.5, %v3019_v36  ;;  %2441 = vlog2.f32 %v1009_v9  ;;  %vm3138_vm2 = vcmp.lt.f32.partialorder %v988_v58, 0.0004427343  ;;  %v3143_v40 = vadd.f32 %v2868_v12, %v782_v7 }
 0x11b   : > { %v3133_v26 = vpop.eup %2421  ;;  %v1018_v35 = vadd.f32 1.0, %v3037_v37  ;;  %v1027_v16 = vadd.f32 1.0, %v3048_v19  ;;  %2443 = vpow2.f32 %v913_v1  ;;  %v911_v48 = vmul.f32 1.442695, %v851_v6 }
 0x11c   : > { %v2424_v21 = vpop.eup %2423  ;;  %v1012_v51 = vmul.f32 -0.5, %v3043_v4  ;;  %vm3151_vm4 = vcmp.lt.f32.partialorder %v997_v53, 0.0004427343  ;;  %v917_v12 = vmul.f32 1.442695, %v854_v20  ;;  %vm800_vm5 = vcmp.gt.f32.partialorder %v2905_v46, 20.0 }
 0x11d   : > { %v2426_v41 = vpop.eup %2425  ;;  %v975_v22 = vmul.f32 0.6931472, %v2424_v21  ;;  %2445 = vlog2.f32 %v1018_v35  ;;  %v996_v29 = vmul.f32 %v3027_v47, %v995_v32  ;;  %v1004_v1 = vadd.f32 1.0, %v1003_v30 }
 0x11e   : > { %v3149_v59 = vpop.eup %2427  ;;  %v984_v58 = vmul.f32 0.6931472, %v2426_v41  ;;  %v1006_v6 = vand.u32 2147483647, %v3019_v36  ;;  %v853_v35 = vmin.f32 %v3143_v40, 20.0  ;;  %2447 = vlog2.f32 %v1027_v16 }
 0x11f   : > { %v981_v7 = vsel %vm3115_vm0, %v978_v56, %v975_v22  ;;  %v3160_v21 = vpop.eup %2429  ;;  %2449 = vpow2.f32 %v911_v48  ;;  %v1013_v56 = vadd.f32 1.0, %v1012_v51  ;;  %v1036_v24 = vadd.f32 1.0, %v3045_v8 }
 0x120   : > { %v1213_v53 = vsel %vm797_vm14, %v2902_v45, %v981_v7  ;;  %v990_v20 = vsel %vm3138_vm2, %v987_v2, %v984_v58  ;;  %v2432_v32 = vpop.eup %2431  ;;  %2451 = vpow2.f32 %v917_v12  ;;  %v1015_v45 = vand.u32 2147483647, %v3043_v4 }
 0x121   : > { %2285 = vmatprep.mubr.msk.f32.mxu1 %vm1254_vm1, %v1213_v53  ;;  %v1214_v47 = vsel %vm798_vm15, %v2897_v42, %v990_v20  ;;  %v1021_v2 = vmul.f32 -0.5, %v3037_v37  ;;  %v1045_v30 = vadd.f32 1.0, %v3079_v63  ;;  %v3177_v34 = vpop.eup %2433  ;;  %vm801_vm6 = vcmp.gt.f32.partialorder %v2921_v57, 20.0 }
 0x122   : > { %2286 = vmatmul.mubr.msk.f32.gmra.mxu1 %vm1254_vm1, %v1214_v47  ;;  %v993_v16 = vmul.f32 0.6931472, %v2432_v32  ;;  %v1005_v42 = vmul.f32 %v3019_v36, %v1004_v1  ;;  %vm3181_vm7 = vcmp.lt.f32.partialorder %v1006_v6, 0.0004427343  ;;  %2453 = vlog2.f32 %v1036_v24 }
 0x123   : > { %v2436_v22 = vpop.eup %2435  ;;  %v915_v48 = vmul.f32 1.442695, %v853_v35  ;;  %v1024_v51 = vand.u32 2147483647, %v3037_v37  ;;  %v1030_v58 = vmul.f32 -0.5, %v3048_v19  ;;  %2455 = vlog2.f32 %v1045_v30 }
 0x124   : > { %v3187_v12 = vpop.eup %2437  ;;  %v999_v7 = vsel %vm3151_vm4, %v996_v29, %v993_v16  ;;  %v1002_v53 = vmul.f32 0.6931472, %v2436_v22  ;;  %v1014_v36 = vmul.f32 %v3043_v4, %v1013_v56  ;;  %v1054_v1 = vadd.f32 1.0, %v3056_v15 }
 0x125   : > { %vm802_vm8 = vcmp.gt.f32.partialorder %v2917_v55, 20.0  ;;  %v1215_v6 = vsel %vm799_vm3, %v2909_v49, %v999_v7  ;;  %vm3197_vm9 = vcmp.lt.f32.partialorder %v1015_v45, 0.0004427343  ;;  %v1022_v35 = vadd.f32 1.0, %v1021_v2  ;;  %v3202_v9 = vpop.eup %2439 }
 0x126   : > { %v1039_v47 = vmul.f32 -0.5, %v3045_v8  ;;  %2288 = vmatprep.mubr.msk.f32.mxu1 %vm1254_vm1, %v1215_v6  ;;  %v1008_v4 = vsel %vm3181_vm7, %v1005_v42, %v1002_v53  ;;  %v1048_v29 = vmul.f32 -0.5, %v3079_v63  ;;  %2457 = vlog2.f32 %v1054_v1 }
 0x127   : > { %v1063_v56 = vadd.f32 1.0, %v3093_v27  ;;  %v2442_v49 = vpop.eup %2441  ;;  %vm803_vm10 = vcmp.gt.f32.partialorder %v2929_v0, 20.0  ;;  %v1216_v24 = vsel %vm800_vm5, %v2905_v46, %v1008_v4  ;;  %v1031_v32 = vadd.f32 1.0, %v1030_v58 }
 0x128   : > { %v1033_v45 = vand.u32 2147483647, %v3048_v19  ;;  %v1042_v2 = vand.u32 2147483647, %v3045_v8  ;;  %2289 = vmatmul.mubr.msk.f32.gmra.mxu1 %vm1254_vm1, %v1216_v24  ;;  %v1011_v30 = vmul.f32 0.6931472, %v2442_v49  ;;  %v3218_v41 = vpop.eup %2443  ;;  %v1023_v22 = vmul.f32 %v3037_v37, %v1022_v35 }
 0x129   : > { %v1051_v16 = vand.u32 2147483647, %v3079_v63  ;;  %2459 = vlog2.f32 %v1063_v56  ;;  %v1072_v42 = vadd.f32 1.0, %v3086_v10  ;;  %vm3221_vm11 = vcmp.lt.f32.partialorder %v1024_v51, 0.0004427343 }
 0x12a   : > { %2461 = vpow2.f32 %v915_v48  ;;  %v1040_v58 = vadd.f32 1.0, %v1039_v47  ;;  %v2446_v7 = vpop.eup %2445  ;;  %vm804_vm12 = vcmp.gt.f32.partialorder %v2926_v62, 20.0  ;;  %v1017_v53 = vsel %vm3197_vm9, %v1014_v36, %v1011_v30 }
 0x12b   : > { %v1049_v1 = vadd.f32 1.0, %v1048_v29  ;;  %2463 = vlog2.f32 %v1072_v42  ;;  %v1081_v6 = vadd.f32 1.0, %v3111_v52  ;;  %vm805_vm13 = vcmp.gt.f32.partialorder %v2946_v23, 20.0  ;;  %v2448_v47 = vpop.eup %2447 }
 0x12c   : > { %v1217_v37 = vsel %vm801_vm6, %v2921_v57, %v1017_v53  ;;  %v1020_v48 = vmul.f32 0.6931472, %v2446_v7  ;;  %vm3233_vm14 = vcmp.lt.f32.partialorder %v1033_v45, 0.0004427343  ;;  %v1057_v35 = vmul.f32 -0.5, %v3056_v15  ;;  %v3248_v57 = vpop.eup %2449 }
 0x12d   : > { %2291 = vmatprep.mubr.msk.f32.mxu1 %vm1254_vm1, %v1217_v37  ;;  %v1032_v36 = vmul.f32 %v3048_v19, %v1031_v32  ;;  %vm3240_vm15 = vcmp.lt.f32.partialorder %v1042_v2, 0.0004427343  ;;  %vm3244_vm0 = vcmp.lt.f32.partialorder %v1051_v16, 0.0004427343  ;;  %2465 = vlog2.f32 %v1081_v6  ;;  %v3254_v19 = vpop.eup %2451 }
 0x12e   : > { %v1026_v29 = vsel %vm3221_vm11, %v1023_v22, %v1020_v48  ;;  %v1029_v56 = vmul.f32 0.6931472, %v2448_v47  ;;  %v1066_v49 = vmul.f32 -0.5, %v3093_v27  ;;  %v1090_v24 = vadd.f32 1.0, %v3107_v39 }
 0x12f   : > { %vm806_vm2 = vcmp.gt.f32.partialorder %v2935_v5, 20.0  ;;  %v1218_v32 = vsel %vm802_vm8, %v2917_v55, %v1026_v29  ;;  %v1041_v45 = vmul.f32 %v3045_v8, %v1040_v58  ;;  %v1050_v2 = vmul.f32 %v3079_v63, %v1049_v1  ;;  %v2454_v16 = vpop.eup %2453 }
 0x130   : > { %v1060_v30 = vand.u32 2147483647, %v3056_v15  ;;  %2292 = vmatmul.mubr.msk.f32.gmra.mxu1 %vm1254_vm1, %v1218_v32  ;;  %v1035_v42 = vsel %vm3233_vm14, %v1032_v36, %v1029_v56  ;;  %v1058_v22 = vadd.f32 1.0, %v1057_v35  ;;  %2467 = vlog2.f32 %v1090_v24  ;;  %v2456_v7 = vpop.eup %2455 }
 0x131   : > { %v1099_v46 = vadd.f32 1.0, %v3126_v11  ;;  %vm807_vm3 = vcmp.gt.f32.partialorder %v2966_v54, 20.0  ;;  %v1219_v55 = vsel %vm803_vm10, %v2929_v0, %v1035_v42  ;;  %v1038_v8 = vmul.f32 0.6931472, %v2454_v16 }
 0x132   : > { %v1069_v63 = vand.u32 2147483647, %v3093_v27  ;;  %v1075_v58 = vmul.f32 -0.5, %v3086_v10  ;;  %2294 = vmatprep.mubr.msk.f32.mxu1 %vm1254_vm1, %v1219_v55  ;;  %v1047_v53 = vmul.f32 0.6931472, %v2456_v7  ;;  %v1067_v1 = vadd.f32 1.0, %v1066_v49 }
 0x133   : > { %v1084_v6 = vmul.f32 -0.5, %v3111_v52  ;;  %2469 = vlog2.f32 %v1099_v46  ;;  %vm808_vm4 = vcmp.gt.f32.partialorder %v2957_v43, 20.0  ;;  %v1044_v37 = vsel %vm3240_vm15, %v1041_v45, %v1038_v8  ;;  %v2458_v35 = vpop.eup %2457 }
 0x134   : > { %vm3278_vm5 = vcmp.lt.f32.partialorder %v1060_v30, 0.0004427343  ;;  %v1078_v0 = vand.u32 2147483647, %v3086_v10  ;;  %v1108_v51 = vadd.f32 1.0, %v3120_v38  ;;  %v1220_v47 = vsel %vm804_vm12, %v2926_v62, %v1044_v37 }
 0x135   : > { %v1053_v36 = vsel %vm3244_vm0, %v1050_v2, %v1047_v53  ;;  %v1059_v29 = vmul.f32 %v3056_v15, %v1058_v22  ;;  %v1093_v20 = vmul.f32 -0.5, %v3107_v39  ;;  %vm809_vm6 = vcmp.gt.f32.partialorder %v2983_v44, 20.0  ;;  %2295 = vmatmul.mubr.msk.f32.gmra.mxu1 %vm1254_vm1, %v1220_v47 }
 0x136   : > { %v1221_v56 = vsel %vm805_vm13, %v2946_v23, %v1053_v36  ;;  %v1056_v49 = vmul.f32 0.6931472, %v2458_v35  ;;  %v1076_v24 = vadd.f32 1.0, %v1075_v58  ;;  %2471 = vlog2.f32 %v1108_v51  ;;  %v2460_v32 = vpop.eup %2459 }
 0x137   : > { %2297 = vmatprep.mubr.msk.f32.mxu1 %vm1254_vm1, %v1221_v56  ;;  %v1068_v62 = vmul.f32 %v3093_v27, %v1067_v1  ;;  %vm3298_vm7 = vcmp.lt.f32.partialorder %v1069_v63, 0.0004427343  ;;  %v1085_v4 = vadd.f32 1.0, %v1084_v6  ;;  %v1117_v45 = vadd.f32 1.0, %v3149_v59  ;;  %v3303_v2 = vpop.eup %2461 }
 0x138   : > { %v1062_v23 = vsel %vm3278_vm5, %v1059_v29, %v1056_v49  ;;  %v1065_v30 = vmul.f32 0.6931472, %v2460_v32  ;;  %vm3307_vm8 = vcmp.lt.f32.partialorder %v1078_v0, 0.0004427343  ;;  %v1102_v42 = vmul.f32 -0.5, %v3126_v11  ;;  %v2464_v27 = vpop.eup %2463 }
 0x139   : > { %vm810_vm9 = vcmp.gt.f32.partialorder %v2980_v3, 20.0  ;;  %v1222_v22 = vsel %vm806_vm2, %v2935_v5, %v1062_v23  ;;  %v1087_v46 = vand.u32 2147483647, %v3111_v52  ;;  %v1094_v7 = vadd.f32 1.0, %v1093_v20 }
 0x13a   : > { %2473 = vlog2.f32 %v1117_v45  ;;  %2298 = vmatmul.mubr.msk.f32.gmra.mxu1 %vm1254_vm1, %v1222_v22  ;;  %v1071_v55 = vsel %vm3298_vm7, %v1068_v62, %v1065_v30  ;;  %v1074_v8 = vmul.f32 0.6931472, %v2464_v27  ;;  %v1077_v63 = vmul.f32 %v3086_v10, %v1076_v24  ;;  %v2466_v53 = vpop.eup %2465 }
 0x13b   : > { %v1111_v58 = vmul.f32 -0.5, %v3120_v38  ;;  %v1223_v1 = vsel %vm807_vm3, %v2966_v54, %v1071_v55  ;;  %v1086_v5 = vmul.f32 %v3111_v52, %v1085_v4  ;;  %v1096_v6 = vand.u32 2147483647, %v3107_v39 }
 0x13c   : > { %v1126_v37 = vadd.f32 1.0, %v3133_v26  ;;  %2300 = vmatprep.mubr.msk.f32.mxu1 %vm1254_vm1, %v1223_v1  ;;  %v1080_v48 = vsel %vm3307_vm8, %v1077_v63, %v1074_v8  ;;  %v1083_v0 = vmul.f32 0.6931472, %v2466_v53  ;;  %v1103_v10 = vadd.f32 1.0, %v1102_v42 }
 0x13d   : > { %v1135_v51 = vadd.f32 1.0, %v3177_v34  ;;  %v1224_v35 = vsel %vm808_vm4, %v2957_v43, %v1080_v48  ;;  %vm1088_vm10 = vcmp.lt.f32.partialorder %v1087_v46, 0.0004427343  ;;  %v1095_v54 = vmul.f32 %v3107_v39, %v1094_v7  ;;  %v2468_v52 = vpop.eup %2467 }
 0x13e   : > { %2475 = vlog2.f32 %v1126_v37  ;;  %vm812_vm11 = vcmp.gt.f32.partialorder %v2991_v13, 20.0  ;;  %2301 = vmatmul.mubr.msk.f32.gmra.mxu1 %vm1254_vm1, %v1224_v35  ;;  %v1089_v47 = vsel %vm1088_vm10, %v1086_v5, %v1083_v0  ;;  %v1105_v36 = vand.u32 2147483647, %v3126_v11 }
 0x13f   : > { %v1112_v29 = vadd.f32 1.0, %v1111_v58  ;;  %2477 = vlog2.f32 %v1135_v51  ;;  %v1225_v20 = vsel %vm809_vm6, %v2983_v44, %v1089_v47  ;;  %v1092_v56 = vmul.f32 0.6931472, %v2468_v52 }
 0x140   : > { %v1120_v43 = vmul.f32 -0.5, %v3149_v59  ;;  %v1144_v39 = vadd.f32 1.0, %v3160_v21  ;;  %v2470_v49 = vpop.eup %2469  ;;  %2303 = vmatprep.mubr.msk.f32.mxu1 %vm1254_vm1, %v1225_v20  ;;  %vm1097_vm12 = vcmp.lt.f32.partialorder %v1096_v6, 0.0004427343  ;;  %v1104_v24 = vmul.f32 %v3126_v11, %v1103_v10 }
 0x141   : > { %v1114_v32 = vand.u32 2147483647, %v3120_v38  ;;  %v1129_v62 = vmul.f32 -0.5, %v3133_v26  ;;  %v1098_v15 = vsel %vm1097_vm12, %v1095_v54, %v1092_v56  ;;  %v1101_v4 = vmul.f32 0.6931472, %v2470_v49 }
 0x142   : > { %2479 = vlog2.f32 %v1144_v39  ;;  %v1153_v44 = vadd.f32 1.0, %v3202_v9  ;;  %vm811_vm13 = vcmp.gt.f32.partialorder %v2997_v18, 20.0  ;;  %v1226_v45 = vsel %vm810_vm9, %v2980_v3, %v1098_v15 }
 0x143   : > { %vm1106_vm14 = vcmp.lt.f32.partialorder %v1105_v36, 0.0004427343  ;;  %v1123_v23 = vand.u32 2147483647, %v3149_v59  ;;  %v2472_v30 = vpop.eup %2471  ;;  %2304 = vmatmul.mubr.msk.f32.gmra.mxu1 %vm1254_vm1, %v1226_v45  ;;  %v1113_v16 = vmul.f32 %v3120_v38, %v1112_v29  ;;  %v1121_v42 = vadd.f32 1.0, %v1120_v43 }
 0x144   : > { %v1107_v11 = vsel %vm1106_vm14, %v1104_v24, %v1101_v4  ;;  %2481 = vlog2.f32 %v1153_v44  ;;  %v1110_v22 = vmul.f32 0.6931472, %v2472_v30  ;;  %v1138_v46 = vmul.f32 -0.5, %v3177_v34 }
 0x145   : > { %v1227_v27 = vsel %vm811_vm13, %v2997_v18, %v1107_v11  ;;  %v1162_v7 = vadd.f32 1.0, %v3187_v12  ;;  %vm814_vm15 = vcmp.gt.f32.partialorder %v3008_v28, 20.0  ;;  %vm813_vm0 = vcmp.gt.f32.partialorder %v3031_v50, 20.0 }
 0x146   : > { %2306 = vmatprep.mubr.msk.f32.mxu1 %vm1254_vm1, %v1227_v27  ;;  %vm1115_vm2 = vcmp.lt.f32.partialorder %v1114_v32, 0.0004427343  ;;  %v1130_v3 = vadd.f32 1.0, %v1129_v62  ;;  %v1132_v55 = vand.u32 2147483647, %v3133_v26  ;;  %v1171_v18 = vadd.f32 1.0, %v3248_v57 }
 0x147   : > { %v2474_v38 = vpop.eup %2473  ;;  %v1116_v8 = vsel %vm1115_vm2, %v1113_v16, %v1110_v22  ;;  %v1141_v63 = vand.u32 2147483647, %v3177_v34  ;;  %2483 = vlog2.f32 %v1162_v7  ;;  %v1122_v1 = vmul.f32 %v3149_v59, %v1121_v42 }
 0x148   : > { %v1228_v58 = vsel %vm812_vm11, %v2991_v13, %v1116_v8  ;;  %v1119_v53 = vmul.f32 0.6931472, %v2474_v38  ;;  %v1147_v5 = vmul.f32 -0.5, %v3160_v21  ;;  %vm815_vm3 = vcmp.gt.f32.partialorder %v3054_v25, 20.0 }
 0x149   : > { %2307 = vmatmul.mubr.msk.f32.gmra.mxu1 %vm1254_vm1, %v1228_v58  ;;  %vm1124_vm4 = vcmp.lt.f32.partialorder %v1123_v23, 0.0004427343  ;;  %v1139_v6 = vadd.f32 1.0, %v1138_v46  ;;  %2485 = vlog2.f32 %v1171_v18  ;;  %vm3372_vm5 = vcmp.lt.f32.partialorder %v1132_v55, 0.0004427343 }
 0x14a   : > { %v1125_v37 = vsel %vm1124_vm4, %v1122_v1, %v1119_v53  ;;  %v1156_v0 = vmul.f32 -0.5, %v3202_v9  ;;  %v1180_v13 = vadd.f32 1.0, %v3218_v41  ;;  %v1131_v51 = vmul.f32 %v3133_v26, %v1130_v3 }
 0x14b   : > { %v2476_v10 = vpop.eup %2475  ;;  %v1229_v59 = vsel %vm813_vm0, %v3031_v50, %v1125_v37  ;;  %vm3382_vm6 = vcmp.lt.f32.partialorder %v1141_v63, 0.0004427343  ;;  %v1150_v54 = vand.u32 2147483647, %v3160_v21  ;;  %v1148_v36 = vadd.f32 1.0, %v1147_v5 }
 0x14c   : > { %v2478_v52 = vpop.eup %2477  ;;  %2309 = vmatprep.mubr.msk.f32.mxu1 %vm1254_vm1, %v1229_v59  ;;  %v1128_v47 = vmul.f32 0.6931472, %v2476_v10  ;;  %2487 = vlog2.f32 %v1180_v13  ;;  %v1189_v29 = vadd.f32 1.0, %v3303_v2  ;;  %v1140_v56 = vmul.f32 %v3177_v34, %v1139_v6 }
 0x14d   : > { %v1137_v20 = vmul.f32 0.6931472, %v2478_v52  ;;  %v1165_v50 = vmul.f32 -0.5, %v3187_v12  ;;  %v1198_v26 = vadd.f32 1.0, %v3254_v19  ;;  %v1157_v39 = vadd.f32 1.0, %v1156_v0 }
 0x14e   : > { %v1134_v43 = vsel %vm3372_vm5, %v1131_v51, %v1128_v47  ;;  %v1159_v49 = vand.u32 2147483647, %v3202_v9  ;;  %2489 = vlog2.f32 %v1189_v29  ;;  %v1174_v34 = vmul.f32 -0.5, %v3248_v57 }
 0x14f   : > { %v2480_v24 = vpop.eup %2479  ;;  %v1230_v32 = vsel %vm814_vm15, %v3008_v28, %v1134_v43  ;;  %v1143_v62 = vsel %vm3382_vm6, %v1140_v56, %v1137_v20  ;;  %2491 = vlog2.f32 %v1198_v26  ;;  %v1149_v44 = vmul.f32 %v3160_v21, %v1148_v36 }
 0x150   : > { %2310 = vmatmul.mubr.msk.f32.gmra.mxu1 %vm1254_vm1, %v1230_v32  ;;  %v1231_v15 = vsel %vm815_vm3, %v3054_v25, %v1143_v62  ;;  %v1146_v4 = vmul.f32 0.6931472, %v2480_v24  ;;  %vm816_vm7 = vcmp.gt.f32.partialorder %v3040_v60, 20.0  ;;  %vm1151_vm8 = vcmp.lt.f32.partialorder %v1150_v54, 0.0004427343 }
 0x151   : > { %v2482_v45 = vpop.eup %2481  ;;  %2312 = vmatprep.mubr.msk.f32.mxu1 %vm1254_vm1, %v1231_v15  ;;  %v1166_v28 = vadd.f32 1.0, %v1165_v50  ;;  %v1168_v23 = vand.u32 2147483647, %v3187_v12  ;;  %v1158_v16 = vmul.f32 %v3202_v9, %v1157_v39  ;;  %v1183_v42 = vmul.f32 -0.5, %v3218_v41 }
 0x152   : > { %v1152_v30 = vsel %vm1151_vm8, %v1149_v44, %v1146_v4  ;;  %v1155_v11 = vmul.f32 0.6931472, %v2482_v45  ;;  %vm1160_vm9 = vcmp.lt.f32.partialorder %v1159_v49, 0.0004427343  ;;  %v1175_v27 = vadd.f32 1.0, %v1174_v34 }
 0x153   : > { %v1232_v25 = vsel %vm816_vm7, %v3040_v60, %v1152_v30  ;;  %vm817_vm10 = vcmp.gt.f32.partialorder %v3070_v14, 20.0  ;;  %v1177_v46 = vand.u32 2147483647, %v3248_v57  ;;  %v1192_v7 = vmul.f32 -0.5, %v3303_v2 }
 0x154   : > { %v2484_v21 = vpop.eup %2483  ;;  %2313 = vmatmul.mubr.msk.f32.gmra.mxu1 %vm1254_vm1, %v1232_v25  ;;  %v1161_v22 = vsel %vm1160_vm9, %v1158_v16, %v1155_v11  ;;  %v1167_v9 = vmul.f32 %v3187_v12, %v1166_v28  ;;  %v1201_v38 = vmul.f32 -0.5, %v3254_v19  ;;  %vm818_vm11 = vcmp.gt.f32.partialorder %v3062_v31, 20.0 }
 0x155   : > { %v1233_v3 = vsel %vm817_vm10, %v3070_v14, %v1161_v22  ;;  %v1164_v55 = vmul.f32 0.6931472, %v2484_v21  ;;  %vm1169_vm12 = vcmp.lt.f32.partialorder %v1168_v23, 0.0004427343  ;;  %v1184_v8 = vadd.f32 1.0, %v1183_v42 }
 0x156   : > { %v2486_v60 = vpop.eup %2485  ;;  %2315 = vmatprep.mubr.msk.f32.mxu1 %vm1254_vm1, %v1233_v3  ;;  %v1176_v58 = vmul.f32 %v3248_v57, %v1175_v27  ;;  %v1186_v53 = vand.u32 2147483647, %v3218_v41  ;;  %vm1178_vm13 = vcmp.lt.f32.partialorder %v1177_v46, 0.0004427343  ;;  %v1193_v1 = vadd.f32 1.0, %v1192_v7 }
 0x157   : > { %v1170_v63 = vsel %vm1169_vm12, %v1167_v9, %v1164_v55  ;;  %v1173_v18 = vmul.f32 0.6931472, %v2486_v60  ;;  %vm819_vm14 = vcmp.gt.f32.partialorder %v3097_v33, 20.0  ;;  %v1195_v6 = vand.u32 2147483647, %v3303_v2 }
 0x158   : > { %v1234_v14 = vsel %vm818_vm11, %v3062_v31, %v1170_v63  ;;  %v1202_v37 = vadd.f32 1.0, %v1201_v38  ;;  %v1185_v57 = vmul.f32 %v3218_v41, %v1184_v8  ;;  %v1204_v13 = vand.u32 2147483647, %v3254_v19 }
 0x159   : > { %v2488_v12 = vpop.eup %2487  ;;  %2316 = vmatmul.mubr.msk.f32.gmra.mxu1 %vm1254_vm1, %v1234_v14  ;;  %v1179_v5 = vsel %vm1178_vm13, %v1176_v58, %v1173_v18  ;;  %vm1187_vm15 = vcmp.lt.f32.partialorder %v1186_v53, 0.0004427343  ;;  %vm820_vm0 = vcmp.gt.f32.partialorder %v3077_v61, 20.0  ;;  %v1194_v35 = vmul.f32 %v3303_v2, %v1193_v1 }
 0x15a   : > { %v1235_v48 = vsel %vm819_vm14, %v3097_v33, %v1179_v5  ;;  %v1182_v0 = vmul.f32 0.6931472, %v2488_v12  ;;  %vm1196_vm2 = vcmp.lt.f32.partialorder %v1195_v6, 0.0004427343  ;;  %v1203_v52 = vmul.f32 %v3254_v19, %v1202_v37 }
 0x15b   : > { %v2490_v10 = vpop.eup %2489  ;;  %2318 = vmatprep.mubr.msk.f32.mxu1 %vm1254_vm1, %v1235_v48  ;;  %vm821_vm3 = vcmp.gt.f32.partialorder %v3143_v40, 20.0  ;;  %vm1205_vm4 = vcmp.lt.f32.partialorder %v1204_v13, 0.0004427343  ;;  %vm822_vm5 = vcmp.gt.f32.partialorder %v3105_v17, 20.0  ;;  %v1800_v7 = vlaneseq }
 0x15c   : > { %v2492_v31 = vpop.eup %2491  ;;  %v1188_v59 = vsel %vm1187_vm15, %v1185_v57, %v1182_v0  ;;  %v1191_v51 = vmul.f32 0.6931472, %v2490_v10  ;;  %vm1835_vm6 = vcmask 269312  }
 0x15d   : > { %v1236_v54 = vsel %vm820_vm0, %v3077_v61, %v1188_v59  ;;  %v1200_v33 = vmul.f32 0.6931472, %v2492_v31  ;;  %v3445_v61 = vld [vmem:[%s3757_s4] ss:$0 sm:$0xff]  ;;  %v3478_v18 = vand.u32 127, %v1800_v7 }
 0x15e   : > { %2319 = vmatmul.mubr.msk.f32.gmra.mxu1 %vm1254_vm1, %v1236_v54  ;;  %v1197_v41 = vsel %vm1196_vm2, %v1194_v35, %v1191_v51 }
 0x15f   : > { %v1237_v47 = vsel %vm821_vm3, %v3143_v40, %v1197_v41  ;;  %v1206_v36 = vsel %vm1205_vm4, %v1203_v52, %v1200_v33 }
 0x160   : > { %2321 = vmatprep.mubr.msk.f32.mxu1 %vm1254_vm1, %v1237_v47  ;;  %v1238_v2 = vsel %vm822_vm5, %v3105_v17, %v1206_v36 }
 0x162   : > { %2322 = vmatmul.mubr.msk.f32.gmra.mxu1 %vm1254_vm1, %v1238_v2  ;;  %vm1802_vm1 = vcmp.eq.s32.totalorder %v3478_v18, 0 }
 0x1c5   : > { %v2278_v19 = vpop.f32.mrf.mxu0 }
 0x1c6   : > { %v3448_v29 = vadd.f32 %v2278_v19, %v3445_v61 }
 0x1c7   : > { %v1417_v20 = vpop.f32.mrf.mxu0 }
 0x1c8   : > { %v1577_v40 = vsub.f32 0.0, %v3448_v29  ;;  %v3452_v56 = vadd.f32 %v3445_v61, %v1417_v20 }
 0x1ca   : > { %v1610_v50 = vmul.f32 1.442695, %v1577_v40  ;;  %v1576_v17 = vsub.f32 0.0, %v3452_v56 }
 0x1cc   : > { %2493 = vpow2.f32 %v1610_v50  ;;  %v1608_v26 = vmul.f32 1.442695, %v1576_v17 }
 0x1ce   : > { %v2281_v43 = vpop.f32.mrf.mxu1  ;;  %2495 = vpow2.f32 %v1608_v26 }
 0x1cf   : > { %v3456_v39 = vadd.f32 %v2281_v43, %v3445_v61 }
 0x1d0   : > { %v1427_v49 = vpop.f32.mrf.mxu1 }
 0x1d1   : > { %v1579_v24 = vsub.f32 0.0, %v3456_v39  ;;  %v3460_v32 = vadd.f32 %v3445_v61, %v1427_v49 }
 0x1d3   : > { %v1614_v62 = vmul.f32 1.442695, %v1579_v24  ;;  %v1578_v34 = vsub.f32 0.0, %v3460_v32 }
 0x1d5   : > { %2497 = vpow2.f32 %v1614_v62  ;;  %v1612_v15 = vmul.f32 1.442695, %v1578_v34 }
 0x1d7   : > { %2499 = vpow2.f32 %v1612_v15 }
 0x1d9   : > { %v2494_v4 = vpop.eup %2493  ;;  %v2284_v23 = vpop.f32.mrf.mxu1 }
 0x1da   : > { %v1673_v44 = vadd.f32 1.0, %v2494_v4  ;;  %v3464_v30 = vadd.f32 %v2284_v23, %v3445_v61 }
 0x1db   : > { %v2496_v45 = vpop.eup %2495  ;;  %v1437_v11 = vpop.f32.mrf.mxu1 }
 0x1dc   : > { %2501 = vrcp.f32 %v1673_v44  ;;  %v1672_v28 = vadd.f32 1.0, %v2496_v45  ;;  %v1581_v16 = vsub.f32 0.0, %v3464_v30  ;;  %v3468_v42 = vadd.f32 %v3445_v61, %v1437_v11 }
 0x1de   : > { %2503 = vrcp.f32 %v1672_v28  ;;  %v1618_v21 = vmul.f32 1.442695, %v1581_v16  ;;  %v1580_v22 = vsub.f32 0.0, %v3468_v42 }
 0x1e0   : > { %v1616_v55 = vmul.f32 1.442695, %v1580_v22 }
 0x1e2   : > { %v2498_v25 = vpop.eup %2497  ;;  %v2287_v9 = vpop.f32.mrf.mxu1 }
 0x1e3   : > { %v1675_v27 = vadd.f32 1.0, %v2498_v25  ;;  %v3472_v38 = vadd.f32 %v2287_v9, %v3445_v61 }
 0x1e4   : > { %v2500_v46 = vpop.eup %2499  ;;  %v1447_v60 = vpop.f32.mrf.mxu1 }
 0x1e5   : > { %2505 = vrcp.f32 %v1675_v27  ;;  %v1674_v3 = vadd.f32 1.0, %v2500_v46  ;;  %v1583_v8 = vsub.f32 0.0, %v3472_v38  ;;  %v3476_v63 = vadd.f32 %v3445_v61, %v1447_v60 }
 0x1e6   : > { %2507 = vpow2.f32 %v1618_v21 }
 0x1e7   : > { %2509 = vrcp.f32 %v1674_v3  ;;  %v1622_v58 = vmul.f32 1.442695, %v1583_v8  ;;  %v1582_v53 = vsub.f32 0.0, %v3476_v63 }
 0x1e8   : > { %2511 = vpow2.f32 %v1616_v55  ;;  %v2290_v5 = vpop.f32.mrf.mxu1 }
 0x1e9   : > { %v2502_v14 = vpop.eup %2501  ;;  %2513 = vpow2.f32 %v1622_v58  ;;  %v1620_v12 = vmul.f32 1.442695, %v1582_v53  ;;  %v3484_v37 = vadd.f32 %v2290_v5, %v3445_v61 }
 0x1ea   : > { %v1737_v1 = vmul.f32 1.002, %v2502_v14  ;;  %v1457_v57 = vpop.f32.mrf.mxu1 }
 0x1eb   : > { %v2504_v6 = vpop.eup %2503  ;;  %2515 = vpow2.f32 %v1620_v12  ;;  %v1585_v13 = vsub.f32 0.0, %v3484_v37  ;;  %v3493_v10 = vadd.f32 %v3445_v61, %v1457_v57 }
 0x1ec   : > { %v2094_v48 = vadd.f32 -0.001, %v1737_v1  ;;  %v1736_v0 = vmul.f32 1.002, %v2504_v6 }
 0x1ed   : > { %v1626_v51 = vmul.f32 1.442695, %v1585_v13  ;;  %v1584_v35 = vsub.f32 0.0, %v3493_v10 }
 0x1ee   : > { %v1804_v31 = vsel %vm1802_vm1, %v3448_v29, %v2094_v48  ;;  %v2093_v59 = vadd.f32 -0.001, %v1736_v0 }
 0x1ef   : > { %1837 = vst.msk [vmem:[%s3489_s11 + $0x8] sm:$0xff] %vm1835_vm6, %v1804_v31  ;;  %2517 = vpow2.f32 %v1626_v51  ;;  %v1624_v47 = vmul.f32 1.442695, %v1584_v35 }
 0x1f0   : > { %v1803_v33 = vsel %vm1802_vm1, %v3452_v56, %v2093_v59  ;;  %v2293_v36 = vpop.f32.mrf.mxu1 }
 0x1f1   : > { %1836 = vst.msk [vmem:[%s3489_s11] sm:$0xff] %vm1835_vm6, %v1803_v33  ;;  %v3507_v29 = vadd.f32 %v2293_v36, %v3445_v61  ;;  %2519 = vpow2.f32 %v1624_v47 }
 0x1f2   : > { %v2506_v54 = vpop.eup %2505  ;;  %v1467_v17 = vpop.f32.mrf.mxu1 }
 0x1f3   : > { %v2508_v52 = vpop.eup %2507  ;;  %v1739_v41 = vmul.f32 1.002, %v2506_v54  ;;  %v1587_v26 = vsub.f32 0.0, %v3507_v29  ;;  %v3511_v43 = vadd.f32 %v3445_v61, %v1467_v17 }
 0x1f4   : > { %v2510_v2 = vpop.eup %2509  ;;  %v1677_v19 = vadd.f32 1.0, %v2508_v52 }
 0x1f5   : > { %v2512_v20 = vpop.eup %2511  ;;  %v2096_v40 = vadd.f32 -0.001, %v1739_v41  ;;  %v1738_v50 = vmul.f32 1.002, %v2510_v2  ;;  %v1630_v62 = vmul.f32 1.442695, %v1587_v26  ;;  %v2296_v15 = vpop.f32.mrf.mxu1 }
 0x1f6   : > { %2521 = vrcp.f32 %v1677_v19  ;;  %v1676_v56 = vadd.f32 1.0, %v2512_v20  ;;  %v1586_v34 = vsub.f32 0.0, %v3511_v43  ;;  %v2514_v4 = vpop.eup %2513  ;;  %v3523_v45 = vadd.f32 %v2296_v15, %v3445_v61 }
 0x1f7   : > { %v1806_v49 = vsel %vm1802_vm1, %v3456_v39, %v2096_v40  ;;  %v2095_v24 = vadd.f32 -0.001, %v1738_v50  ;;  %v1679_v28 = vadd.f32 1.0, %v2514_v4  ;;  %v1477_v23 = vpop.f32.mrf.mxu1 }
 0x1f8   : > { %1839 = vst.msk [vmem:[%s3489_s11 + $0x18] sm:$0xff] %vm1835_vm6, %v1806_v49  ;;  %2523 = vrcp.f32 %v1676_v56  ;;  %v1628_v39 = vmul.f32 1.442695, %v1586_v34  ;;  %v2516_v11 = vpop.eup %2515  ;;  %v1589_v16 = vsub.f32 0.0, %v3523_v45  ;;  %v3529_v25 = vadd.f32 %v3445_v61, %v1477_v23 }
 0x1f9   : > { %v1805_v44 = vsel %vm1802_vm1, %v3460_v32, %v2095_v24  ;;  %2525 = vpow2.f32 %v1630_v62  ;;  %v1678_v27 = vadd.f32 1.0, %v2516_v11 }
 0x1fa   : > { %1838 = vst.msk [vmem:[%s3489_s11 + $0x10] sm:$0xff] %vm1835_vm6, %v1805_v44  ;;  %2527 = vrcp.f32 %v1679_v28  ;;  %v2299_v21 = vpop.f32.mrf.mxu1  ;;  %v1634_v32 = vmul.f32 1.442695, %v1589_v16  ;;  %v1588_v22 = vsub.f32 0.0, %v3529_v25 }
 0x1fb   : > { %2529 = vpow2.f32 %v1628_v39  ;;  %v3533_v46 = vadd.f32 %v2299_v21, %v3445_v61 }
 0x1fc   : > { %2531 = vrcp.f32 %v1678_v27  ;;  %v1487_v7 = vpop.f32.mrf.mxu1  ;;  %v1632_v3 = vmul.f32 1.442695, %v1588_v22  ;;  %v2518_v60 = vpop.eup %2517 }
 0x1fd   : > { %2533 = vpow2.f32 %v1634_v32  ;;  %v1591_v55 = vsub.f32 0.0, %v3533_v46  ;;  %v3537_v9 = vadd.f32 %v3445_v61, %v1487_v7  ;;  %v1681_v58 = vadd.f32 1.0, %v2518_v60 }
 0x1fe   : > { %v2302_v8 = vpop.f32.mrf.mxu1  ;;  %2535 = vpow2.f32 %v1632_v3  ;;  %v2520_v1 = vpop.eup %2519 }
 0x1ff   : > { %v1638_v53 = vmul.f32 1.442695, %v1591_v55  ;;  %v1590_v14 = vsub.f32 0.0, %v3537_v9  ;;  %v3541_v12 = vadd.f32 %v2302_v8, %v3445_v61  ;;  %2537 = vrcp.f32 %v1681_v58 }
 0x200   : > { %v1497_v5 = vpop.f32.mrf.mxu1  ;;  %v1680_v48 = vadd.f32 1.0, %v2520_v1 }
 0x201   : > { %v1636_v0 = vmul.f32 1.442695, %v1590_v14  ;;  %v3544_v57 = vadd.f32 %v3445_v61, %v1497_v5  ;;  %2539 = vpow2.f32 %v1638_v53  ;;  %v1593_v31 = vsub.f32 0.0, %v3541_v12 }
 0x202   : > { %2541 = vrcp.f32 %v1680_v48 }
 0x203   : > { %v2522_v6 = vpop.eup %2521  ;;  %v1592_v51 = vsub.f32 0.0, %v3544_v57  ;;  %v2305_v35 = vpop.f32.mrf.mxu1  ;;  %2543 = vpow2.f32 %v1636_v0  ;;  %v1642_v52 = vmul.f32 1.442695, %v1593_v31 }
 0x204   : > { %v1741_v13 = vmul.f32 1.002, %v2522_v6  ;;  %v3549_v36 = vadd.f32 %v2305_v35, %v3445_v61 }
 0x205   : > { %v2524_v59 = vpop.eup %2523  ;;  %v1640_v47 = vmul.f32 1.442695, %v1592_v51  ;;  %v1507_v2 = vpop.f32.mrf.mxu1  ;;  %2545 = vpow2.f32 %v1642_v52 }
 0x206   : > { %v2098_v54 = vadd.f32 -0.001, %v1741_v13  ;;  %v1740_v33 = vmul.f32 1.002, %v2524_v59  ;;  %v2526_v41 = vpop.eup %2525  ;;  %v1595_v17 = vsub.f32 0.0, %v3549_v36  ;;  %v3558_v56 = vadd.f32 %v3445_v61, %v1507_v2 }
 0x207   : > { %v1683_v40 = vadd.f32 1.0, %v2526_v41  ;;  %v2528_v50 = vpop.eup %2527  ;;  %2547 = vpow2.f32 %v1640_v47 }
 0x208   : > { %v1808_v19 = vsel %vm1802_vm1, %v3464_v30, %v2098_v54  ;;  %v2097_v20 = vadd.f32 -0.001, %v1740_v33  ;;  %v2530_v26 = vpop.eup %2529  ;;  %v1743_v24 = vmul.f32 1.002, %v2528_v50  ;;  %v1646_v15 = vmul.f32 1.442695, %v1595_v17 }
 0x209   : > { %1841 = vst.msk [vmem:[%s3489_s11 + $0x28] sm:$0xff] %vm1835_vm6, %v1808_v19  ;;  %2549 = vrcp.f32 %v1683_v40  ;;  %v2308_v30 = vpop.f32.mrf.mxu1  ;;  %v2532_v62 = vpop.eup %2531  ;;  %v1682_v34 = vadd.f32 1.0, %v2530_v26  ;;  %v1594_v4 = vsub.f32 0.0, %v3558_v56 }
 0x20a   : > { %v1807_v49 = vsel %vm1802_vm1, %v3468_v42, %v2097_v20  ;;  %v3567_v44 = vadd.f32 %v2308_v30, %v3445_v61  ;;  %v2534_v28 = vpop.eup %2533  ;;  %v2100_v39 = vadd.f32 -0.001, %v1743_v24  ;;  %v1742_v23 = vmul.f32 1.002, %v2532_v62 }
 0x20b   : > { %1840 = vst.msk [vmem:[%s3489_s11 + $0x20] sm:$0xff] %vm1835_vm6, %v1807_v49  ;;  %v1517_v11 = vpop.f32.mrf.mxu1  ;;  %2551 = vrcp.f32 %v1682_v34  ;;  %v1685_v42 = vadd.f32 1.0, %v2534_v28  ;;  %v1644_v16 = vmul.f32 1.442695, %v1594_v4  ;;  %v2536_v21 = vpop.eup %2535 }
 0x20c   : > { %v1597_v27 = vsub.f32 0.0, %v3567_v44  ;;  %v1810_v32 = vsel %vm1802_vm1, %v3472_v38, %v2100_v39  ;;  %v2099_v22 = vadd.f32 -0.001, %v1742_v23  ;;  %2553 = vpow2.f32 %v1646_v15  ;;  %v2538_v60 = vpop.eup %2537 }
 0x20d   : > { %v3574_v7 = vadd.f32 %v3445_v61, %v1517_v11  ;;  %1843 = vst.msk [vmem:[%s3489_s11 + $0x38] sm:$0xff] %vm1835_vm6, %v1810_v32  ;;  %2555 = vrcp.f32 %v1685_v42  ;;  %v1684_v3 = vadd.f32 1.0, %v2536_v21  ;;  %v1745_v38 = vmul.f32 1.002, %v2538_v60 }
 0x20e   : > { %v1650_v55 = vmul.f32 1.442695, %v1597_v27  ;;  %v1809_v8 = vsel %vm1802_vm1, %v3476_v63, %v2099_v22  ;;  %2557 = vpow2.f32 %v1644_v16  ;;  %v2540_v53 = vpop.eup %2539 }
 0x20f   : > { %v1596_v58 = vsub.f32 0.0, %v3574_v7  ;;  %1842 = vst.msk [vmem:[%s3489_s11 + $0x30] sm:$0xff] %vm1835_vm6, %v1809_v8  ;;  %2559 = vrcp.f32 %v1684_v3  ;;  %v2542_v1 = vpop.eup %2541  ;;  %v1687_v5 = vadd.f32 1.0, %v2540_v53  ;;  %v2102_v13 = vadd.f32 -0.001, %v1745_v38 }
 0x210   : > { %v2311_v14 = vpop.f32.mrf.mxu1  ;;  %2561 = vpow2.f32 %v1650_v55  ;;  %v2544_v0 = vpop.eup %2543  ;;  %v1744_v63 = vmul.f32 1.002, %v2542_v1 }
 0x211   : > { %v1648_v6 = vmul.f32 1.442695, %v1596_v58  ;;  %v3585_v48 = vadd.f32 %v2311_v14, %v3445_v61  ;;  %2563 = vrcp.f32 %v1687_v5  ;;  %v1686_v59 = vadd.f32 1.0, %v2544_v0 }
 0x212   : > { %v1527_v31 = vpop.f32.mrf.mxu1  ;;  %v2546_v54 = vpop.eup %2545  ;;  %v1812_v33 = vsel %vm1802_vm1, %v3484_v37, %v2102_v13  ;;  %v2101_v52 = vadd.f32 -0.001, %v1744_v63 }
 0x213   : > { %v1599_v51 = vsub.f32 0.0, %v3585_v48  ;;  %v3589_v35 = vadd.f32 %v3445_v61, %v1527_v31  ;;  %2565 = vpow2.f32 %v1648_v6  ;;  %1845 = vst.msk [vmem:[%s3489_s11 + $0x48] sm:$0xff] %vm1835_vm6, %v1812_v33  ;;  %v1689_v2 = vadd.f32 1.0, %v2546_v54 }
 0x214   : > { %v2314_v41 = vpop.f32.mrf.mxu1  ;;  %v2548_v47 = vpop.eup %2547  ;;  %2567 = vrcp.f32 %v1686_v59  ;;  %v1811_v50 = vsel %vm1802_vm1, %v3493_v10, %v2101_v52 }
 0x215   : > { %v1654_v19 = vmul.f32 1.442695, %v1599_v51  ;;  %v1598_v20 = vsub.f32 0.0, %v3589_v35  ;;  %v1688_v17 = vadd.f32 1.0, %v2548_v47  ;;  %v3601_v26 = vadd.f32 %v2314_v41, %v3445_v61  ;;  %1844 = vst.msk [vmem:[%s3489_s11 + $0x40] sm:$0xff] %vm1835_vm6, %v1811_v50 }
 0x216   : > { %v2550_v40 = vpop.eup %2549  ;;  %v1537_v37 = vpop.f32.mrf.mxu1  ;;  %2569 = vrcp.f32 %v1689_v2 }
 0x217   : > { %v1747_v49 = vmul.f32 1.002, %v2550_v40  ;;  %v1652_v24 = vmul.f32 1.442695, %v1598_v20  ;;  %v3606_v30 = vadd.f32 %v3445_v61, %v1537_v37  ;;  %2571 = vrcp.f32 %v1688_v17 }
 0x218   : > { %v1601_v62 = vsub.f32 0.0, %v3601_v26  ;;  %v2552_v34 = vpop.eup %2551  ;;  %2573 = vpow2.f32 %v1654_v19 }
 0x219   : > { %v2104_v15 = vadd.f32 -0.001, %v1747_v49  ;;  %v1600_v10 = vsub.f32 0.0, %v3606_v30  ;;  %v2317_v4 = vpop.f32.mrf.mxu1  ;;  %v2554_v28 = vpop.eup %2553  ;;  %v1746_v39 = vmul.f32 1.002, %v2552_v34  ;;  %2575 = vpow2.f32 %v1652_v24 }
 0x21a   : > { %v1658_v23 = vmul.f32 1.442695, %v1601_v62  ;;  %v3611_v11 = vadd.f32 %v2317_v4, %v3445_v61  ;;  %v2556_v42 = vpop.eup %2555  ;;  %v1691_v27 = vadd.f32 1.0, %v2554_v28 }
 0x21b   : > { %v1814_v16 = vsel %vm1802_vm1, %v3507_v29, %v2104_v15  ;;  %v1656_v21 = vmul.f32 1.442695, %v1600_v10  ;;  %v1547_v32 = vpop.f32.mrf.mxu1  ;;  %v2558_v22 = vpop.eup %2557  ;;  %v2103_v3 = vadd.f32 -0.001, %v1746_v39  ;;  %v1749_v55 = vmul.f32 1.002, %v2556_v42 }
 0x21c   : > { %1847 = vst.msk [vmem:[%s3489_s11 + $0x58] sm:$0xff] %vm1835_vm6, %v1814_v16  ;;  %2577 = vpow2.f32 %v1658_v23  ;;  %v1603_v60 = vsub.f32 0.0, %v3611_v11  ;;  %v2560_v8 = vpop.eup %2559  ;;  %v1690_v58 = vadd.f32 1.0, %v2558_v22  ;;  %v3620_v53 = vadd.f32 %v3445_v61, %v1547_v32 }
 0x21d   : > { %2579 = vrcp.f32 %v1691_v27  ;;  %v2562_v38 = vpop.eup %2561  ;;  %v1813_v29 = vsel %vm1802_vm1, %v3511_v43, %v2103_v3  ;;  %v2106_v14 = vadd.f32 -0.001, %v1749_v55  ;;  %v1748_v1 = vmul.f32 1.002, %v2560_v8 }
 0x21e   : > { %2581 = vpow2.f32 %v1656_v21  ;;  %v2320_v5 = vpop.f32.mrf.mxu1  ;;  %1846 = vst.msk [vmem:[%s3489_s11 + $0x50] sm:$0xff] %vm1835_vm6, %v1813_v29  ;;  %v1693_v6 = vadd.f32 1.0, %v2562_v38  ;;  %v1662_v0 = vmul.f32 1.442695, %v1603_v60  ;;  %v1602_v13 = vsub.f32 0.0, %v3620_v53  ;;  %v2564_v63 = vpop.eup %2563 }
 0x21f   : > { %2583 = vrcp.f32 %v1690_v58  ;;  %v1816_v31 = vsel %vm1802_vm1, %v3523_v45, %v2106_v14  ;;  %v2105_v59 = vadd.f32 -0.001, %v1748_v1  ;;  %v3632_v43 = vadd.f32 %v2320_v5, %v3445_v61 }
 0x220   : > { %v1557_v51 = vpop.f32.mrf.mxu1  ;;  %v2566_v54 = vpop.eup %2565  ;;  %1849 = vst.msk [vmem:[%s3489_s11 + $0x68] sm:$0xff] %vm1835_vm6, %v1816_v31  ;;  %v1751_v33 = vmul.f32 1.002, %v2564_v63  ;;  %2585 = vrcp.f32 %v1693_v6  ;;  %v1660_v52 = vmul.f32 1.442695, %v1602_v13 }
 0x221   : > { %v3637_v41 = vadd.f32 %v3445_v61, %v1557_v51  ;;  %v2568_v47 = vpop.eup %2567  ;;  %v1815_v45 = vsel %vm1802_vm1, %v3529_v25, %v2105_v59  ;;  %v1692_v2 = vadd.f32 1.0, %v2566_v54  ;;  %2587 = vpow2.f32 %v1662_v0 }
 0x222   : > { %v1605_v19 = vsub.f32 0.0, %v3632_v43  ;;  %v2323_v20 = vpop.f32.mrf.mxu1  ;;  %1848 = vst.msk [vmem:[%s3489_s11 + $0x60] sm:$0xff] %vm1835_vm6, %v1815_v45  ;;  %v2108_v40 = vadd.f32 -0.001, %v1751_v33  ;;  %v1750_v50 = vmul.f32 1.002, %v2568_v47  ;;  %2589 = vpow2.f32 %v1660_v52 }
 0x223   : > { %v1604_v17 = vsub.f32 0.0, %v3637_v41  ;;  %v2570_v37 = vpop.eup %2569  ;;  %2591 = vrcp.f32 %v1692_v2  ;;  %v3647_v24 = vadd.f32 %v2323_v20, %v3445_v61 }
 0x224   : > { %v1666_v49 = vmul.f32 1.442695, %v1605_v19  ;;  %v1567_v25 = vpop.f32.mrf.mxu1  ;;  %v2572_v62 = vpop.eup %2571  ;;  %v1818_v34 = vsel %vm1802_vm1, %v3533_v46, %v2108_v40  ;;  %v2107_v15 = vadd.f32 -0.001, %v1750_v50  ;;  %v1753_v10 = vmul.f32 1.002, %v2570_v37 }
 0x225   : > { %v1664_v4 = vmul.f32 1.442695, %v1604_v17  ;;  %v2574_v28 = vpop.eup %2573  ;;  %1851 = vst.msk [vmem:[%s3489_s11 + $0x78] sm:$0xff] %vm1835_vm6, %v1818_v34  ;;  %v1752_v39 = vmul.f32 1.002, %v2572_v62  ;;  %v1607_v23 = vsub.f32 0.0, %v3647_v24  ;;  %v3656_v42 = vadd.f32 %v3445_v61, %v1567_v25 }
 0x226   : > { %2593 = vpow2.f32 %v1666_v49  ;;  %v2576_v16 = vpop.eup %2575  ;;  %v1817_v27 = vsel %vm1802_vm1, %v3537_v9, %v2107_v15  ;;  %v2110_v46 = vadd.f32 -0.001, %v1753_v10  ;;  %v1695_v21 = vadd.f32 1.0, %v2574_v28 }
 0x227   : > { %2595 = vpow2.f32 %v1664_v4  ;;  %1850 = vst.msk [vmem:[%s3489_s11 + $0x70] sm:$0xff] %vm1835_vm6, %v1817_v27  ;;  %v2109_v32 = vadd.f32 -0.001, %v1752_v39  ;;  %v1694_v22 = vadd.f32 1.0, %v2576_v16  ;;  %v1670_v3 = vmul.f32 1.442695, %v1607_v23 }
 0x228   : > { %v1606_v55 = vsub.f32 0.0, %v3656_v42  ;;  %v1820_v61 = vsel %vm1802_vm1, %v3541_v12, %v2110_v46  ;;  %2597 = vrcp.f32 %v1695_v21 }
 0x229   : > { %v2578_v60 = vpop.eup %2577  ;;  %1853 = vst.msk [vmem:[%s3489_s11 + $0x88] sm:$0xff] %vm1835_vm6, %v1820_v61  ;;  %v1819_v9 = vsel %vm1802_vm1, %v3544_v57, %v2109_v32  ;;  %2599 = vrcp.f32 %v1694_v22 }
 0x22a   : > { %v2580_v8 = vpop.eup %2579  ;;  %v1697_v58 = vadd.f32 1.0, %v2578_v60  ;;  %v1668_v38 = vmul.f32 1.442695, %v1606_v55  ;;  %1852 = vst.msk [vmem:[%s3489_s11 + $0x80] sm:$0xff] %vm1835_vm6, %v1819_v9  ;;  %2601 = vpow2.f32 %v1670_v3 }
 0x22b   : > { %v2582_v29 = vpop.eup %2581  ;;  %v1755_v14 = vmul.f32 1.002, %v2580_v8 }
 0x22c   : > { %v2584_v1 = vpop.eup %2583  ;;  %2603 = vrcp.f32 %v1697_v58  ;;  %v1696_v12 = vadd.f32 1.0, %v2582_v29 }
 0x22d   : > { %v2112_v5 = vadd.f32 -0.001, %v1755_v14  ;;  %v1754_v6 = vmul.f32 1.002, %v2584_v1  ;;  %2605 = vpow2.f32 %v1668_v38  ;;  %v2586_v0 = vpop.eup %2585 }
 0x22e   : > { %2607 = vrcp.f32 %v1696_v12  ;;  %v2588_v13 = vpop.eup %2587  ;;  %v1757_v31 = vmul.f32 1.002, %v2586_v0 }
 0x22f   : > { %v1822_v57 = vsel %vm1802_vm1, %v3549_v36, %v2112_v5  ;;  %v2111_v63 = vadd.f32 -0.001, %v1754_v6  ;;  %v2590_v59 = vpop.eup %2589  ;;  %v1699_v51 = vadd.f32 1.0, %v2588_v13 }
 0x230   : > { %1855 = vst.msk [vmem:[%s3489_s11 + $0x98] sm:$0xff] %vm1835_vm6, %v1822_v57  ;;  %v2592_v54 = vpop.eup %2591  ;;  %v2114_v52 = vadd.f32 -0.001, %v1757_v31  ;;  %v1698_v47 = vadd.f32 1.0, %v2590_v59 }
 0x231   : > { %v1821_v33 = vsel %vm1802_vm1, %v3558_v56, %v2111_v63  ;;  %v1756_v45 = vmul.f32 1.002, %v2592_v54  ;;  %2609 = vrcp.f32 %v1699_v51 }
 0x232   : > { %1854 = vst.msk [vmem:[%s3489_s11 + $0x90] sm:$0xff] %vm1835_vm6, %v1821_v33  ;;  %v1824_v2 = vsel %vm1802_vm1, %v3567_v44, %v2114_v52  ;;  %2611 = vrcp.f32 %v1698_v47 }
 0x233   : > { %v2594_v36 = vpop.eup %2593  ;;  %1857 = vst.msk [vmem:[%s3489_s11 + $0xa8] sm:$0xff] %vm1835_vm6, %v1824_v2  ;;  %v2113_v20 = vadd.f32 -0.001, %v1756_v45 }
 0x234   : > { %v2596_v19 = vpop.eup %2595  ;;  %v1701_v40 = vadd.f32 1.0, %v2594_v36 }
 0x235   : > { %v1700_v50 = vadd.f32 1.0, %v2596_v19  ;;  %v2598_v56 = vpop.eup %2597  ;;  %v1823_v17 = vsel %vm1802_vm1, %v3574_v7, %v2113_v20 }
 0x236   : > { %2613 = vrcp.f32 %v1701_v40  ;;  %v2600_v37 = vpop.eup %2599  ;;  %1856 = vst.msk [vmem:[%s3489_s11 + $0xa0] sm:$0xff] %vm1835_vm6, %v1823_v17  ;;  %v1759_v49 = vmul.f32 1.002, %v2598_v56 }
 0x237   : > { %2615 = vrcp.f32 %v1700_v50  ;;  %v2602_v44 = vpop.eup %2601  ;;  %v1758_v25 = vmul.f32 1.002, %v2600_v37 }
 0x238   : > { %v2116_v34 = vadd.f32 -0.001, %v1759_v49  ;;  %v1703_v15 = vadd.f32 1.0, %v2602_v44 }
 0x239   : > { %v2604_v62 = vpop.eup %2603  ;;  %v2115_v4 = vadd.f32 -0.001, %v1758_v25 }
 0x23a   : > { %v2606_v10 = vpop.eup %2605  ;;  %v1761_v28 = vmul.f32 1.002, %v2604_v62  ;;  %v1826_v7 = vsel %vm1802_vm1, %v3585_v48, %v2116_v34  ;;  %2617 = vrcp.f32 %v1703_v15 }
 0x23b   : > { %v2608_v39 = vpop.eup %2607  ;;  %v1702_v23 = vadd.f32 1.0, %v2606_v10  ;;  %1859 = vst.msk [vmem:[%s3489_s11 + $0xb8] sm:$0xff] %vm1835_vm6, %v1826_v7  ;;  %v1825_v16 = vsel %vm1802_vm1, %v3589_v35, %v2115_v4 }
 0x23c   : > { %v2118_v27 = vadd.f32 -0.001, %v1761_v28  ;;  %v1760_v46 = vmul.f32 1.002, %v2608_v39  ;;  %1858 = vst.msk [vmem:[%s3489_s11 + $0xb0] sm:$0xff] %vm1835_vm6, %v1825_v16 }
 0x23d   : > { %2619 = vrcp.f32 %v1702_v23 }
 0x23e   : > { %v1828_v21 = vsel %vm1802_vm1, %v3601_v26, %v2118_v27  ;;  %v2117_v48 = vadd.f32 -0.001, %v1760_v46  ;;  %v2610_v32 = vpop.eup %2609 }
 0x23f   : > { %1861 = vst.msk [vmem:[%s3489_s11 + $0xc8] sm:$0xff] %vm1835_vm6, %v1828_v21  ;;  %v2612_v22 = vpop.eup %2611  ;;  %v1763_v3 = vmul.f32 1.002, %v2610_v32 }
 0x240   : > { %v1827_v35 = vsel %vm1802_vm1, %v3606_v30, %v2117_v48  ;;  %v1762_v55 = vmul.f32 1.002, %v2612_v22 }
 0x241   : > { %1860 = vst.msk [vmem:[%s3489_s11 + $0xc0] sm:$0xff] %vm1835_vm6, %v1827_v35  ;;  %v2120_v60 = vadd.f32 -0.001, %v1763_v3 }
 0x242   : > { %v2119_v8 = vadd.f32 -0.001, %v1762_v55 }
 0x243   : > { %v2614_v61 = vpop.eup %2613  ;;  %v1830_v9 = vsel %vm1802_vm1, %v3611_v11, %v2120_v60 }
 0x244   : > { %v2616_v26 = vpop.eup %2615  ;;  %v1765_v58 = vmul.f32 1.002, %v2614_v61  ;;  %1863 = vst.msk [vmem:[%s3489_s11 + $0xd8] sm:$0xff] %vm1835_vm6, %v1830_v9  ;;  %v1829_v30 = vsel %vm1802_vm1, %v3620_v53, %v2119_v8 }
 0x245   : > { %v1764_v38 = vmul.f32 1.002, %v2616_v26  ;;  %1862 = vst.msk [vmem:[%s3489_s11 + $0xd0] sm:$0xff] %vm1835_vm6, %v1829_v30 }
 0x246   : > { %v2122_v29 = vadd.f32 -0.001, %v1765_v58 }
 0x247   : > { %v2121_v14 = vadd.f32 -0.001, %v1764_v38  ;;  %v2618_v1 = vpop.eup %2617 }
 0x248   : > { %v1832_v12 = vsel %vm1802_vm1, %v3632_v43, %v2122_v29  ;;  %v1767_v5 = vmul.f32 1.002, %v2618_v1 }
 0x249   : > { %1865 = vst.msk [vmem:[%s3489_s11 + $0xe8] sm:$0xff] %vm1835_vm6, %v1832_v12  ;;  %v1831_v11 = vsel %vm1802_vm1, %v3637_v41, %v2121_v14 }
 0x24a   : > { %v2620_v53 = vpop.eup %2619  ;;  %1864 = vst.msk [vmem:[%s3489_s11 + $0xe0] sm:$0xff] %vm1835_vm6, %v1831_v11  ;;  %v2124_v6 = vadd.f32 -0.001, %v1767_v5 }
 0x24b   : > { %v1766_v0 = vmul.f32 1.002, %v2620_v53 }
 0x24c   : > { %v1834_v13 = vsel %vm1802_vm1, %v3647_v24, %v2124_v6 }
 0x24d   : > { %v2123_v57 = vadd.f32 -0.001, %v1766_v0  ;;  %1867 = vst.msk [vmem:[%s3489_s11 + $0xf8] sm:$0xff] %vm1835_vm6, %v1834_v13 }
 0x24f   : > { %v1833_v43 = vsel %vm1802_vm1, %v3656_v42, %v2123_v57 }
 0x250   : > { %1866 = vst.msk [vmem:[%s3489_s11 + $0xf0] sm:$0xff] %vm1835_vm6, %v1833_v43 }
 0x251 PF: > { %s15_s20 = sadd.s32 1, %s2643_s20   ;;  %s3795_s18 = smov %s2639_s19 }
 0x252   : > { %p12_p5 = scmp.ge.s32.totalorder %s15_s20, 4   ;;  %s3796_s19 = smov %s3798_s21 }
 0x254   :  { %14 = sbr.rel (!%p12_p5) target bundleno = 2 (0x2), region = 72 }

</bundles_post_ra>
